<compile_context>
chip_gen: v7x
topology: tpu7x:2x2x1
jax: 0.10.0
libtpu: 0.0.40
codegen_flags: <defaults>
</compile_context>

<pallas_src>
import functools

import jax
import jax.numpy as jnp
from jax import lax
from jax.experimental import pallas as pl
from jax.experimental.pallas import tpu as pltpu

LANE = 128
EPS = 1e-5


def _conv3x3_fused(x_bf, w_ref, H, W, Cp):
    """3x3 conv on one halo-padded bf16 image tile, K-fused per ky row.

    x_bf:  (H+2, Wp, Cp) bf16 tile (halo + sublane pad already in the tile).
    w_ref: (3, 3*Cp, Cp) bf16 ref; row ky holds taps (ky,0..2) stacked along K
           with layout [kx*Cp + cin, cout].
    Returns (H*W, Cp) f32 accumulator (3 MXU matmuls with K = 3*Cp).
    """
    acc = jnp.zeros((H * W, Cp), dtype=jnp.float32)
    for ky in range(3):
        lhs = jnp.concatenate(
            [x_bf[ky:ky + H, kx:kx + W, :] for kx in range(3)],
            axis=-1).reshape(H * W, 3 * Cp)
        acc = acc + jnp.dot(lhs, w_ref[ky], preferred_element_type=jnp.float32)
    return acc


def _conv_stats_kernel(xpad_ref, w_ref, conv_ref, sum_ref, sq_ref, *, H, W, Cp):
    """Pass 1: conv tile (bf16 out) + per-channel sum / sum-of-squares."""
    @pl.when(pl.program_id(1) == 0)
    def _():
        sum_ref[...] = jnp.zeros_like(sum_ref)
        sq_ref[...] = jnp.zeros_like(sq_ref)

    x_bf = xpad_ref[0].astype(jnp.bfloat16)          # hoisted cast, (H+2,Wp,Cp)
    acc = _conv3x3_fused(x_bf, w_ref, H, W, Cp)      # (H*W, Cp) f32

    conv_bf = acc.astype(jnp.bfloat16)
    conv_ref[0] = conv_bf

    # Stats of the exact (bf16-rounded) values that pass 2 will normalize.
    conv_f = conv_bf.astype(jnp.float32)
    sum_ref[...] += jnp.sum(conv_f, axis=0, keepdims=True)[None]
    sq_ref[...] += jnp.sum(conv_f * conv_f, axis=0, keepdims=True)[None]


def _apply_kernel(conv_ref, xpad_ref, scale_ref, bias_ref, out_ref, *, H, W, Cp):
    """Pass 2 (elementwise): folded BN scale/bias -> ReLU -> + residual."""
    conv = conv_ref[0].astype(jnp.float32)                       # (H*W, Cp)
    bn = conv * scale_ref[...] + bias_ref[...]
    x_res = xpad_ref[0][1:1 + H, 1:1 + W, :].reshape(H * W, Cp)  # exact f32 res
    out_ref[0] = (jnp.maximum(bn, 0.0) + x_res).astype(out_ref.dtype)


def _clamp_vmem(est_bytes):
    # Raise the default scoped limit (16 MiB v5e / 32 MiB v6e-v7x) when the
    # blocks need it, but never above v7x's 64 MiB physical VMEM.
    return int(min(max(est_bytes, 32 * 1024 * 1024), 64 * 1024 * 1024))


def resblock_forward(x_nchw, conv_weight, gamma, beta):
    """x_nchw: (N, C, H, W) f32; conv_weight: (C, C, 3, 3) f32 (PyTorch OIHW);
    gamma/beta: (C,) f32.  Returns (N, C, H, W) f32."""
    N, C, H, W = x_nchw.shape
    Cp = -(-C // LANE) * LANE                 # lane-dense channel pad
    Wp = -(-(W + 2) // 8) * 8                 # halo width padded to 8 sublanes
    R = N * H * W
    NC = 2 if (N >= 2 and N % 2 == 0) else 1  # megacore split of the batch
    NPC = N // NC

    # --- layout glue only (no im2col): NCHW -> NHWC, 1px halo + alignment pad.
    x_nhwc = jnp.transpose(x_nchw, (0, 2, 3, 1)).astype(jnp.float32)
    xpad = jnp.pad(x_nhwc, ((0, 0), (1, 1), (1, Wp - W - 1), (0, Cp - C)))

    # torch weight (Cout, Cin, 3, 3) -> (ky, kx, cin, cout), padded, then the
    # 3 kx taps of each ky row are stacked along K: (3, 3*Cp, Cp) bf16.
    w_taps = jnp.transpose(conv_weight, (2, 3, 1, 0))            # (3,3,C,C)
    w_fused = (jnp.zeros((3, 3, Cp, Cp), jnp.float32)
               .at[:, :, :C, :C].set(w_taps)
               .reshape(3, 3 * Cp, Cp)
               .astype(jnp.bfloat16))

    # ---- Pass 1: conv (materialized bf16) + global BN statistics.
    xpad_spec1 = pl.BlockSpec((1, H + 2, Wp, Cp),
                              lambda c, n: (c * NPC + n, 0, 0, 0))
    w_spec1 = pl.BlockSpec((3, 3 * Cp, Cp), lambda c, n: (0, 0, 0))
    conv_spec1 = pl.BlockSpec((1, H * W, Cp), lambda c, n: (c * NPC + n, 0, 0))
    acc_spec1 = pl.BlockSpec((1, 8, Cp), lambda c, n: (c, 0, 0))

    xblk = (H + 2) * Wp * Cp * 4
    wbts = 9 * Cp * Cp * 2
    cblk = H * W * Cp * 2
    stage = (H + 2) * Wp * Cp * 2 + 2 * (H * W * 3 * Cp * 2) + 2 * (H * W * Cp * 4)
    vmem1 = _clamp_vmem(2 * (xblk + cblk) + 2 * wbts + stage + (2 << 20))

    conv_bf, psum, psq = pl.pallas_call(
        functools.partial(_conv_stats_kernel, H=H, W=W, Cp=Cp),
        out_shape=(jax.ShapeDtypeStruct((N, H * W, Cp), jnp.bfloat16),
                   jax.ShapeDtypeStruct((NC, 8, Cp), jnp.float32),
                   jax.ShapeDtypeStruct((NC, 8, Cp), jnp.float32)),
        grid_spec=pltpu.PrefetchScalarGridSpec(
            num_scalar_prefetch=0,
            grid=(NC, NPC),
            in_specs=[xpad_spec1, w_spec1],
            out_specs=(conv_spec1, acc_spec1, acc_spec1),
        ),
        compiler_params=pltpu.CompilerParams(
            dimension_semantics=("parallel", "arbitrary"),
            vmem_limit_bytes=vmem1),
    )(xpad, w_fused)

    # Reduce per-core partials and fold BN (batch stats, biased var, eps=1e-5)
    # into per-channel scale/bias on tiny (1, Cp) vectors.
    ch_sum = jnp.sum(psum[:, 0, :], axis=0, keepdims=True)       # (1, Cp)
    ch_sq = jnp.sum(psq[:, 0, :], axis=0, keepdims=True)
    mean = ch_sum / R
    var = jnp.maximum(ch_sq / R - mean * mean, 0.0)
    gamma_p = jnp.zeros((1, Cp), jnp.float32).at[0, :C].set(gamma)
    beta_p = jnp.zeros((1, Cp), jnp.float32).at[0, :C].set(beta)
    scale = gamma_p * lax.rsqrt(var + EPS)
    bias = beta_p - mean * scale

    # ---- Pass 2: elementwise normalize + ReLU + residual add (parallel).
    conv_spec2 = pl.BlockSpec((1, H * W, Cp), lambda n: (n, 0, 0))
    xpad_spec2 = pl.BlockSpec((1, H + 2, Wp, Cp), lambda n: (n, 0, 0, 0))
    vec_spec2 = pl.BlockSpec((1, Cp), lambda n: (0, 0))
    out_spec2 = pl.BlockSpec((1, H * W, Cp), lambda n: (n, 0, 0))

    oblk = H * W * Cp * 4
    vmem2 = _clamp_vmem(2 * (cblk + xblk + oblk) + (2 << 20))

    out_flat = pl.pallas_call(
        functools.partial(_apply_kernel, H=H, W=W, Cp=Cp),
        out_shape=jax.ShapeDtypeStruct((N, H * W, Cp), jnp.float32),
        grid_spec=pltpu.PrefetchScalarGridSpec(
            num_scalar_prefetch=0,
            grid=(N,),
            in_specs=[conv_spec2, xpad_spec2, vec_spec2, vec_spec2],
            out_specs=out_spec2,
        ),
        compiler_params=pltpu.CompilerParams(
            dimension_semantics=("parallel",),
            vmem_limit_bytes=vmem2),
    )(conv_bf, xpad, scale, bias)

    out_nhwc = out_flat.reshape(N, H, W, Cp)[:, :, :, :C]
    return jnp.transpose(out_nhwc, (0, 3, 1, 2)).astype(x_nchw.dtype)


if __name__ == "__main__":
    key = jax.random.PRNGKey(0)
    k_x, k_w = jax.random.split(key)

    N, C, H, W = 2, 4, 16, 16
    x = jax.random.normal(k_x, (N, C, H, W), dtype=jnp.float32)

    # Deterministic parameter init matching the module __init__:
    # kaiming_normal_(nonlinearity='relu'): std = sqrt(2 / fan_in), fan_in = C*3*3
    fan_in = C * 3 * 3
    w = jax.random.normal(k_w, (C, C, 3, 3), dtype=jnp.float32) * jnp.sqrt(2.0 / fan_in)
    gamma = jnp.full((C,), 0.5, dtype=jnp.float32)   # batch_norm.weight = 0.5
    beta = jnp.zeros((C,), dtype=jnp.float32)        # batch_norm.bias = 0

    out = resblock_forward(x, w, gamma, beta)
    jax.block_until_ready(out)
    assert out.shape == (N, C, H, W)

    # Sanity check against a pure-XLA f32 reference (loose tol: conv operands
    # inside the kernel are bf16 with f32 accumulation).
    conv_ref = lax.conv_general_dilated(
        x, w, window_strides=(1, 1), padding=((1, 1), (1, 1)),
        dimension_numbers=("NCHW", "OIHW", "NCHW"),
        precision=lax.Precision.HIGHEST)
    mean_r = jnp.mean(conv_ref, axis=(0, 2, 3), keepdims=True)
    var_r = jnp.mean((conv_ref - mean_r) ** 2, axis=(0, 2, 3), keepdims=True)
    bn_r = ((conv_ref - mean_r) * lax.rsqrt(var_r + EPS)
            * gamma.reshape(1, C, 1, 1) + beta.reshape(1, C, 1, 1))
    ref = jnp.maximum(bn_r, 0.0) + x
    err = float(jnp.max(jnp.abs(out - ref)))
    assert err < 5e-2, f"max abs err {err}"

    print("KERNEL_OK")
</pallas_src>

<mosaic_0001>
module attributes {stable_mosaic.version = 11 : i64} {
  func.func @_conv_stats_kernel(%arg0: i32, %arg1: i32, %arg2: memref<1x18x24x128xf32, #tpu.memory_space<vmem>>, %arg3: memref<3x384x128xbf16, #tpu.memory_space<vmem>>, %arg4: memref<1x256x128xbf16, #tpu.memory_space<vmem>>, %arg5: memref<1x8x128xf32, #tpu.memory_space<vmem>>, %arg6: memref<1x8x128xf32, #tpu.memory_space<vmem>>) attributes {dimension_semantics = [#tpu.dimension_semantics<parallel>, #tpu.dimension_semantics<arbitrary>], iteration_bounds = array<i64: 2, 1>, scalar_prefetch = 0 : i64, scratch_operands = 0 : i64, tpu.core_type = #tpu.core_type<tc>, window_params = [{transform_indices = @transform_0, window_bounds = array<i64: 1, 18, 24, 128>}, {pipeline_mode = #tpu.pipeline_mode<synchronous>, transform_indices = @transform_1, window_bounds = array<i64: 3, 384, 128>}, {transform_indices = @transform_2, window_bounds = array<i64: 1, 256, 128>}, {transform_indices = @transform_3, window_bounds = array<i64: 1, 8, 128>}, {transform_indices = @transform_4, window_bounds = array<i64: 1, 8, 128>}]} {
    %c0_i32 = arith.constant 0 : i32
    %0 = arith.cmpi eq, %arg1, %c0_i32 : i32
    %1 = arith.extui %0 : i1 to i32
    %c0_i32_0 = arith.constant 0 : i32
    %2 = arith.cmpi ne, %1, %c0_i32_0 : i32
    scf.if %2 {
      %cst_31 = arith.constant 0.000000e+00 : f32
      %54 = vector.broadcast %cst_31 : f32 to vector<1x8x128xf32>
      %c0_32 = arith.constant 0 : index
      %c0_33 = arith.constant 0 : index
      %c0_34 = arith.constant 0 : index
      %55 = vector.load %arg5[%c0_32, %c0_33, %c0_34] : memref<1x8x128xf32, #tpu.memory_space<vmem>>, vector<1x8x128xf32>
      tpu.vector_store %arg5[%c0_32, %c0_33, %c0_34], %54 {strides = array<i32>} : memref<1x8x128xf32, #tpu.memory_space<vmem>>, vector<1x8x128xf32>,
      %cst_35 = arith.constant 0.000000e+00 : f32
      %56 = vector.broadcast %cst_35 : f32 to vector<1x8x128xf32>
      %c0_36 = arith.constant 0 : index
      %c0_37 = arith.constant 0 : index
      %c0_38 = arith.constant 0 : index
      %57 = vector.load %arg6[%c0_36, %c0_37, %c0_38] : memref<1x8x128xf32, #tpu.memory_space<vmem>>, vector<1x8x128xf32>
      tpu.vector_store %arg6[%c0_36, %c0_37, %c0_38], %56 {strides = array<i32>} : memref<1x8x128xf32, #tpu.memory_space<vmem>>, vector<1x8x128xf32>,
    } else {
    }
    %c0 = arith.constant 0 : index
    %c0_1 = arith.constant 0 : index
    %c0_2 = arith.constant 0 : index
    %c0_3 = arith.constant 0 : index
    %3 = vector.load %arg2[%c0, %c0_1, %c0_2, %c0_3] : memref<1x18x24x128xf32, #tpu.memory_space<vmem>>, vector<1x18x24x128xf32>
    %4 = vector.shape_cast %3 : vector<1x18x24x128xf32> to vector<18x24x128xf32>
    %5 = arith.truncf %4 : vector<18x24x128xf32> to vector<18x24x128xbf16>
    %cst = arith.constant 0.000000e+00 : f32
    %6 = vector.broadcast %cst : f32 to vector<256x128xf32>
    %7 = vector.extract_strided_slice %5 {offsets = [0, 0, 0], sizes = [16, 16, 128], strides = [1, 1, 1]} : vector<18x24x128xbf16> to vector<16x16x128xbf16>
    %8 = vector.extract_strided_slice %5 {offsets = [0, 1, 0], sizes = [16, 16, 128], strides = [1, 1, 1]} : vector<18x24x128xbf16> to vector<16x16x128xbf16>
    %9 = vector.extract_strided_slice %5 {offsets = [0, 2, 0], sizes = [16, 16, 128], strides = [1, 1, 1]} : vector<18x24x128xbf16> to vector<16x16x128xbf16>
    %10 = tpu.concatenate %7, %8, %9 in 2 : vector<16x16x128xbf16>, vector<16x16x128xbf16>, vector<16x16x128xbf16> -> vector<16x16x384xbf16>
    %11 = vector.shape_cast %10 : vector<16x16x384xbf16> to vector<256x384xbf16>
    %c0_4 = arith.constant 0 : index
    %c0_5 = arith.constant 0 : index
    %c0_6 = arith.constant 0 : index
    %12 = vector.load %arg3[%c0_4, %c0_5, %c0_6] : memref<3x384x128xbf16, #tpu.memory_space<vmem>>, vector<1x384x128xbf16>
    %13 = vector.shape_cast %12 : vector<1x384x128xbf16> to vector<384x128xbf16>
    %cst_7 = arith.constant dense<0.000000e+00> : vector<256x128xf32>
    %14 = tpu.matmul %11, %13, %cst_7 {dimension_numbers = #tpu.dot_dimension_numbers<[1], [0], [0], [1], [0, 0, 1, 1], [], []>} : vector<256x384xbf16>, vector<384x128xbf16>, vector<256x128xf32> -> vector<256x128xf32>
    %15 = arith.addf %6, %14 : vector<256x128xf32>
    %16 = vector.extract_strided_slice %5 {offsets = [1, 0, 0], sizes = [16, 16, 128], strides = [1, 1, 1]} : vector<18x24x128xbf16> to vector<16x16x128xbf16>
    %17 = vector.extract_strided_slice %5 {offsets = [1, 1, 0], sizes = [16, 16, 128], strides = [1, 1, 1]} : vector<18x24x128xbf16> to vector<16x16x128xbf16>
    %18 = vector.extract_strided_slice %5 {offsets = [1, 2, 0], sizes = [16, 16, 128], strides = [1, 1, 1]} : vector<18x24x128xbf16> to vector<16x16x128xbf16>
    %19 = tpu.concatenate %16, %17, %18 in 2 : vector<16x16x128xbf16>, vector<16x16x128xbf16>, vector<16x16x128xbf16> -> vector<16x16x384xbf16>
    %20 = vector.shape_cast %19 : vector<16x16x384xbf16> to vector<256x384xbf16>
    %c1 = arith.constant 1 : index
    %c0_8 = arith.constant 0 : index
    %c0_9 = arith.constant 0 : index
    %21 = vector.load %arg3[%c1, %c0_8, %c0_9] : memref<3x384x128xbf16, #tpu.memory_space<vmem>>, vector<1x384x128xbf16>
    %22 = vector.shape_cast %21 : vector<1x384x128xbf16> to vector<384x128xbf16>
    %cst_10 = arith.constant dense<0.000000e+00> : vector<256x128xf32>
    %23 = tpu.matmul %20, %22, %cst_10 {dimension_numbers = #tpu.dot_dimension_numbers<[1], [0], [0], [1], [0, 0, 1, 1], [], []>} : vector<256x384xbf16>, vector<384x128xbf16>, vector<256x128xf32> -> vector<256x128xf32>
    %24 = arith.addf %15, %23 : vector<256x128xf32>
    %25 = vector.extract_strided_slice %5 {offsets = [2, 0, 0], sizes = [16, 16, 128], strides = [1, 1, 1]} : vector<18x24x128xbf16> to vector<16x16x128xbf16>
    %26 = vector.extract_strided_slice %5 {offsets = [2, 1, 0], sizes = [16, 16, 128], strides = [1, 1, 1]} : vector<18x24x128xbf16> to vector<16x16x128xbf16>
    %27 = vector.extract_strided_slice %5 {offsets = [2, 2, 0], sizes = [16, 16, 128], strides = [1, 1, 1]} : vector<18x24x128xbf16> to vector<16x16x128xbf16>
    %28 = tpu.concatenate %25, %26, %27 in 2 : vector<16x16x128xbf16>, vector<16x16x128xbf16>, vector<16x16x128xbf16> -> vector<16x16x384xbf16>
    %29 = vector.shape_cast %28 : vector<16x16x384xbf16> to vector<256x384xbf16>
    %c2 = arith.constant 2 : index
    %c0_11 = arith.constant 0 : index
    %c0_12 = arith.constant 0 : index
    %30 = vector.load %arg3[%c2, %c0_11, %c0_12] : memref<3x384x128xbf16, #tpu.memory_space<vmem>>, vector<1x384x128xbf16>
    %31 = vector.shape_cast %30 : vector<1x384x128xbf16> to vector<384x128xbf16>
    %cst_13 = arith.constant dense<0.000000e+00> : vector<256x128xf32>
    %32 = tpu.matmul %29, %31, %cst_13 {dimension_numbers = #tpu.dot_dimension_numbers<[1], [0], [0], [1], [0, 0, 1, 1], [], []>} : vector<256x384xbf16>, vector<384x128xbf16>, vector<256x128xf32> -> vector<256x128xf32>
    %33 = arith.addf %24, %32 : vector<256x128xf32>
    %34 = arith.truncf %33 : vector<256x128xf32> to vector<256x128xbf16>
    %c0_14 = arith.constant 0 : index
    %c0_15 = arith.constant 0 : index
    %c0_16 = arith.constant 0 : index
    %35 = vector.load %arg4[%c0_14, %c0_15, %c0_16] : memref<1x256x128xbf16, #tpu.memory_space<vmem>>, vector<1x256x128xbf16>
    %36 = vector.shape_cast %35 : vector<1x256x128xbf16> to vector<256x128xbf16>
    %37 = vector.shape_cast %34 : vector<256x128xbf16> to vector<1x256x128xbf16>
    tpu.vector_store %arg4[%c0_14, %c0_15, %c0_16], %37 {strides = array<i32>} : memref<1x256x128xbf16, #tpu.memory_space<vmem>>, vector<1x256x128xbf16>,
    %38 = arith.extf %34 : vector<256x128xbf16> to vector<256x128xf32>
    %c0_17 = arith.constant 0 : index
    %c0_18 = arith.constant 0 : index
    %c0_19 = arith.constant 0 : index
    %39 = vector.load %arg5[%c0_17, %c0_18, %c0_19] : memref<1x8x128xf32, #tpu.memory_space<vmem>>, vector<1x8x128xf32>
    %cst_20 = arith.constant dense<0.000000e+00> : vector<128xf32>
    %40 = vector.multi_reduction <add>, %38, %cst_20 [0] : vector<256x128xf32> to vector<128xf32>
    %41 = vector.shape_cast %40 : vector<128xf32> to vector<1x128xf32>
    %42 = vector.shape_cast %41 : vector<1x128xf32> to vector<1x1x128xf32>
    %43 = vector.broadcast %42 : vector<1x1x128xf32> to vector<1x8x128xf32>
    %44 = arith.addf %39, %43 : vector<1x8x128xf32>
    %c0_21 = arith.constant 0 : index
    %c0_22 = arith.constant 0 : index
    %c0_23 = arith.constant 0 : index
    %45 = vector.load %arg5[%c0_21, %c0_22, %c0_23] : memref<1x8x128xf32, #tpu.memory_space<vmem>>, vector<1x8x128xf32>
    tpu.vector_store %arg5[%c0_21, %c0_22, %c0_23], %44 {strides = array<i32>} : memref<1x8x128xf32, #tpu.memory_space<vmem>>, vector<1x8x128xf32>,
    %c0_24 = arith.constant 0 : index
    %c0_25 = arith.constant 0 : index
    %c0_26 = arith.constant 0 : index
    %46 = vector.load %arg6[%c0_24, %c0_25, %c0_26] : memref<1x8x128xf32, #tpu.memory_space<vmem>>, vector<1x8x128xf32>
    %47 = arith.mulf %38, %38 : vector<256x128xf32>
    %cst_27 = arith.constant dense<0.000000e+00> : vector<128xf32>
    %48 = vector.multi_reduction <add>, %47, %cst_27 [0] : vector<256x128xf32> to vector<128xf32>
    %49 = vector.shape_cast %48 : vector<128xf32> to vector<1x128xf32>
    %50 = vector.shape_cast %49 : vector<1x128xf32> to vector<1x1x128xf32>
    %51 = vector.broadcast %50 : vector<1x1x128xf32> to vector<1x8x128xf32>
    %52 = arith.addf %46, %51 : vector<1x8x128xf32>
    %c0_28 = arith.constant 0 : index
    %c0_29 = arith.constant 0 : index
    %c0_30 = arith.constant 0 : index
    %53 = vector.load %arg6[%c0_28, %c0_29, %c0_30] : memref<1x8x128xf32, #tpu.memory_space<vmem>>, vector<1x8x128xf32>
    tpu.vector_store %arg6[%c0_28, %c0_29, %c0_30], %52 {strides = array<i32>} : memref<1x8x128xf32, #tpu.memory_space<vmem>>, vector<1x8x128xf32>,
    return
  }
  func.func @transform_0(%arg0: i32, %arg1: i32) -> (i32, i32, i32, i32) {
    %c1_i32 = arith.constant 1 : i32
    %0 = arith.muli %arg0, %c1_i32 : i32
    %1 = arith.addi %0, %arg1 : i32
    %c0_i32 = arith.constant 0 : i32
    %c0_i32_0 = arith.constant 0 : i32
    %c0_i32_1 = arith.constant 0 : i32
    %c0_i32_2 = arith.constant 0 : i32
    return %1, %c0_i32, %c0_i32_0, %c0_i32_1 : i32, i32, i32, i32
  }
  func.func @transform_1(%arg0: i32, %arg1: i32) -> (i32, i32, i32) {
    %c0_i32 = arith.constant 0 : i32
    %c0_i32_0 = arith.constant 0 : i32
    %c0_i32_1 = arith.constant 0 : i32
    %c0_i32_2 = arith.constant 0 : i32
    return %c0_i32, %c0_i32_0, %c0_i32_1 : i32, i32, i32
  }
  func.func @transform_2(%arg0: i32, %arg1: i32) -> (i32, i32, i32) {
    %c1_i32 = arith.constant 1 : i32
    %0 = arith.muli %arg0, %c1_i32 : i32
    %1 = arith.addi %0, %arg1 : i32
    %c0_i32 = arith.constant 0 : i32
    %c0_i32_0 = arith.constant 0 : i32
    %c0_i32_1 = arith.constant 0 : i32
    return %1, %c0_i32, %c0_i32_0 : i32, i32, i32
  }
  func.func @transform_3(%arg0: i32, %arg1: i32) -> (i32, i32, i32) {
    %c0_i32 = arith.constant 0 : i32
    %c0_i32_0 = arith.constant 0 : i32
    %c0_i32_1 = arith.constant 0 : i32
    return %arg0, %c0_i32, %c0_i32_0 : i32, i32, i32
  }
  func.func @transform_4(%arg0: i32, %arg1: i32) -> (i32, i32, i32) {
    %c0_i32 = arith.constant 0 : i32
    %c0_i32_0 = arith.constant 0 : i32
    %c0_i32_1 = arith.constant 0 : i32
    return %arg0, %c0_i32, %c0_i32_0 : i32, i32, i32
  }
}

</mosaic_0001>

<bundles_post_ra>
// kernel: tpu_custom_call.1
= control target key start
LH: loop header
LB: loop body
LE: loop exit
PB: predicated region body
PF: predicated region fallthrough
CT: control target
= control target key end

     0   :  { %10 = vsyncpa [#allocation3], 0  ;;  %s5266_s0 = inlined_call_operand.hbm [shape: f32[2,18,24,128], index: 0, kind: input, shape index: {}]   ;;  %s5267_s1 = inlined_call_operand.hbm [shape: bf16[3,384,128], index: 1, kind: input, shape index: {}]   ;;  %s5268_s2 = inlined_call_operand.hbm [shape: bf16[2,256,128], index: 2, kind: output, shape index: {0}]   ;;  %s5269_s3 = inlined_call_operand.hbm [shape: f32[2,8,128], index: 3, kind: output, shape index: {1}]   ;;  %s5270_s4 = inlined_call_operand.hbm [shape: f32[2,8,128], index: 4, kind: output, shape index: {2}]  }
   0x1   :  { %12 = vsyncpa [#allocation3 + $0x1], 0 }
   0x2   :  { %13 = vsyncpa [#allocation6], 0 }
   0x3   :  { %14 = vsyncpa [#allocation4], 0 }
   0x4   :  { %16 = vsyncpa [#allocation4 + $0x1], 0 }
   0x5   :  { %17 = vsyncpa [#allocation9], 0 }
   0x6   :  { %19 = vsyncpa [#allocation9 + $0x1], 0  ;;  %s4181_s15 = smov 0   ;;  %s4183_s16 = smov 0  }
   0x7   :  { %s4185_s17 = smov 0   ;;  %s4187_s18 = smov 0  }
   0x8   :  { %s4189_s19 = smov 0   ;;  %s4191_s20 = smov 0  }
   0x9 LB: > { %s4212_s21 = sadd.s32 4294967295, %s4143_s20   ;;  %s2795_s22 = sadd.s32 4294967294, %s4143_s20   ;;  %s4143_s20 = sphi %s4191_s20, %s25_s20   ;;  %s4139_s19 = sphi %s4189_s19, %s5304_s19   ;;  %s4135_s18 = sphi %s4187_s18, %s5303_s18   ;;  %s4131_s17 = sphi %s4185_s17, %s5302_s17   ;;  %s4127_s16 = sphi %s4183_s16, %s5301_s16   ;;  %s4123_s15 = sphi %s4181_s15, %s5300_s15  }
   0xa   : > { %p59_p0 = scmp.ne.s32.totalorder %s4127_s16, %s4123_s15  ;;  %p5271_p1 = scmp.eq.s32.totalorder %s4212_s21, 0 }
   0xb   : > { %p112_p3 = scmp.eq.s32.totalorder %s2795_s22, 1  ;;  %p2796_p5 = scmp.ge.s32.totalorder %s4143_s20, 1 }
   0xc   : > { %p4223_p4 = por %p5271_p1, %p59_p0  ;;  %p171_p7 = scmp.lt.s32.totalorder %s4143_s20, 3 }
   0xd   : > { %p4228_p6 = por %p112_p3, %p59_p0  ;;  %s4145_s26 = smov [#allocation5]  }
   0xe   : > { %s5279_s23 = scalar_select %p4223_p4, 1, 0 }
   0xf   : > { %s5280_s24 = scalar_select %p4228_p6, 1, 0 }
  0x10   : > { %p4233_p8 = pnand %p2796_p5, %p171_p7  ;;  %s183_s27 = sshll.u32 %s4145_s26, 4  ;;  %s184_s27 = int_to_ptr.vmem [resolvable:$true] %s183_s27 }
  0x11   : > { %s37_s29 = sadd.s32 1, %s4139_s19  ;;  %s3939_s6 = scalar_lea.hbm %s5267_s1, 9216 }
  0x12   : > { %s5281_s25 = scalar_select %p4233_p8, 1, 0 }
  0x13   : > { %p3789_p9 = pneg %p4233_p8  ;;  %p3940_p12 = scmp.ne.s32.totalorder %s5267_s1, %s3939_s6 }
  0x14   : > { %p3946_p5 = scmp.lt.u32.totalorder %s3939_s6, %s5267_s1 }
  0x15   : > { %p4242_p11 = pnand %p3789_p9, %p5271_p1 }
  0x17   : > { %p3941_p13 = pneg %p4242_p11 }
  0x19   : > { %p3942_p0 = pnand %p3941_p13, %p3940_p12 }
  0x1b   : > { %p3943_p3 = pneg %p3942_p0 }
  0x1d   : > { %p3948_p7 = pnand %p3946_p5, %p3943_p3 }
  0x1f   : > { %3951 = shalt.err (!%p3948_p7)
}
  0x20   : > { %s3952_s11 = scalar_lea.vmem %s184_s27, 9216  ;;  %p3960_p2 = scmp.lt.s32.totalorder %s184_s27, %s184_s27 }
  0x21   : > { %p3953_p9 = scmp.ne.s32.totalorder %s184_s27, %s3952_s11  ;;  %p3961_p6 = scmp.lt.s32.totalorder %s3952_s11, %s3952_s11 }
  0x23   : > { %p3955_p10 = pnand %p3953_p9, %p3941_p13  ;;  %p3962_p4 = por %p3961_p6, %p3960_p2 }
  0x25   : > { %p3956_p1 = pneg %p3955_p10 }
  0x27   : > { %p3963_p8 = pnand %p3962_p4, %p3956_p1 }
  0x29   : > { %3966 = shalt.err (!%p3963_p8)
}
  0x2a   : > { %s4146_s12 = smov 64   ;;  %s4147_s13 = smov 4  }
  0x2b   : > { %3792 = dma.hbm_to_vmem [thread:$0]  (!%p4242_p11), %s5267_s1, 9216, %s184_s27, [#allocation6], %s4146_s12, %s4146_s12, %s4147_s13  }
  0x2c   : > { %p39_p1 = scmp.ge.s32.totalorder %s37_s29, 2  ;;  %s46_s30 = sadd.s32 1, %s4131_s17 }
  0x2d   : > { %p53_p2 = scmp.ne.s32.totalorder %s4131_s17, %s4127_s16  ;;  %p54_p4 = scmp.eq.s32.totalorder %s4143_s20, 0 }
  0x2e   : > { %s5306_s29 = smov (%p39_p1, %s37_s29), 0  ;;  %p5283_p8 = scmp.eq.s32.totalorder %s4212_s21, 1 }
  0x2f   : > { %p55_p6 = por %p54_p4, %p53_p2  ;;  %s43_s6 = ssub.s32 %s4139_s19, %s5306_s29 }
  0x30   : > { %p4271_p10 = por %p5283_p8, %p53_p2  ;;  %p3808_p12 = scmp.lt.s32.totalorder %s4143_s20, 2 }
  0x31   : > { %p44_p13 = scmp.eq.s32.totalorder %s43_s6, 0  ;;  %s197_s28 = sand.u32 1, %s4131_s17  }
  0x32   : > { %s3774_s7 = smul.u32 432, %s197_s28  ;;  %p4283_p11 = pnand %p3808_p12, %p55_p6 }
  0x33   : > { %s4280_s8 = scalar_select %p44_p13, %s4131_s17, %s46_s30  }
  0x34   : > { %s3775_s27 = smul.u32 6912, %s4139_s19  ;;  %s201_s9 = scalar_lea.vmem [#allocation2], %s3774_s7 }
  0x35   : > { %s209_s10 = sshll.u32 %s201_s9, 4  ;;  %s4294_s26 = scalar_lea.sflag [#allocation3], %s197_s28  ;;  %s4292_s10 = int_to_ptr.vmem [resolvable:$true] %s209_s10 }
  0x36   : > { %s4290_s14 = scalar_lea.hbm %s5266_s0, %s3775_s27  ;;  %p3969_p3 = pneg %p4283_p11 }
  0x37   : > { %s3967_s30 = scalar_lea.hbm %s4290_s14, 6912  ;;  %s3972_s27 = scalar_lea.hbm %s5266_s0, 13824 }
  0x38   : > { %p3968_p0 = scmp.ne.s32.totalorder %s4290_s14, %s3967_s30  ;;  %p3973_p9 = scmp.lt.u32.totalorder %s4290_s14, %s5266_s0 }
  0x39   : > { %p3974_p1 = scmp.lt.u32.totalorder %s3972_s27, %s3967_s30  ;;  %p3976_p4 = scmp.lt.u32.totalorder %s3967_s30, %s4290_s14 }
  0x3a   : > { %p3970_p5 = pnand %p3969_p3, %p3968_p0 }
  0x3b   : > { %p3975_p2 = por %p3974_p1, %p3973_p9 }
  0x3c   : > { %p3971_p7 = pneg %p3970_p5 }
  0x3d   : > { %p3977_p6 = por %p3976_p4, %p3975_p2 }
  0x3f   : > { %p3978_p8 = pnand %p3977_p6, %p3971_p7 }
  0x41   : > { %3981 = shalt.err (!%p3978_p8)
}
  0x42   : > { %s3982_s28 = scalar_lea.vmem %s4292_s10, 6912  ;;  %s4148_s13 = smov [#allocation2]  }
  0x43   : > { %p3983_p12 = scmp.ne.s32.totalorder %s4292_s10, %s3982_s28  ;;  %s3987_s6 = sshll.u32 %s4148_s13, 4  ;;  %s3988_s6 = int_to_ptr.vmem [resolvable:$false] %s3987_s6 }
  0x44   : > { %s3989_s7 = scalar_lea.vmem %s3988_s6, 13824  ;;  %p3990_p5 = scmp.lt.s32.totalorder %s4292_s10, %s3988_s6 }
  0x45   : > { %p3985_p13 = pnand %p3983_p12, %p3969_p3  ;;  %p3991_p9 = scmp.lt.s32.totalorder %s3989_s7, %s3982_s28 }
  0x47   : > { %p3986_p0 = pneg %p3985_p13  ;;  %p3992_p1 = por %p3991_p9, %p3990_p5 }
  0x49   : > { %p3993_p2 = pnand %p3992_p1, %p3986_p0 }
  0x4b   : > { %3996 = shalt.err (!%p3993_p2)
}
  0x4c   : > { %s4149_s30 = smov 128   ;;  %s4150_s27 = smov 8  }
  0x4d   : > { %3796 = dma.hbm_to_vmem [thread:$0]  (!%p4283_p11), %s4290_s14, 6912, %s4292_s10, %s4294_s26, %s4149_s30, %s4149_s30, %s4150_s27  }
  0x4e   : > { %p5286_p3 = scmp.ne.s32.totalorder %s5281_s25, 0 }
  0x50   : > { %221 = sbr.rel (%p5286_p3) target bundleno = 698 (0x2ba), region = 28 }
  0x57   : > { %s4325_s9 = sand.u32 1, %s4127_s16   ;;  %p5287_p7 = scmp.ne.s32.totalorder %s5279_s23, 0 }
  0x58   : > { %s3776_s12 = smul.u32 432, %s4325_s9  ;;  %s224_s28 = scalar_lea.sflag [#allocation3], %s4325_s9 }
  0x5a   : > { %s4329_s13 = scalar_lea.vmem [#allocation2], %s3776_s12 }
  0x5b   : > { %4106 = dma.done.wait (%p5287_p7), %s224_s28, 6912  }
  0x5c   : > { %4108 = vsyncadd (%p5287_p7), %s224_s28, 4294960384  ;;  %p5288_p11 = scmp.eq.s32.totalorder %s4212_s21, 0 }
  0x5e   : > { %4110 = dma.done.wait (%p5288_p11), [#allocation6], 9216   ;;  %p5289_p4 = pmov %p5288_p11 }
  0x5f   : > { %v3867_v0 = vld [vmem:[#allocation5 + $0x100] sm:$0xff]   ;;  %v3870_v3 = vld [vmem:[#allocation5 + $0x108] sm:$0xff]   ;;  %v3873_v6 = vld [vmem:[#allocation5 + $0x110] sm:$0xff]   ;;  %vm365_vm0 = vsmask.f32 7424  ;;  %vm606_vm1 = vcmask 1046528  }
  0x60   : > { %4112 = vsyncadd (%p5289_p4), [#allocation6], 4294958080  ;;  %v4339_v1 = vld [vmem:[#allocation5 + $0x140] sm:$0xff]   ;;  %3046 = vmatprep.subr.bf16.mxu0 %v3867_v0  ;;  %v4343_v4 = vld [vmem:[#allocation5 + $0x148] sm:$0xff]   ;;  %s2802_s23 = sshll.u32 %s4325_s9, 7  ;;  %s2950_s10 = sshll.u32 %s4135_s18, 11 }
  0x61   : > { %v3869_v2 = vld [vmem:[#allocation5 + $0xc0] sm:$0xff]   ;;  %3598 = vmatprep.subr.bf16.mxu1 %v4339_v1  ;;  %v3872_v5 = vld [vmem:[#allocation5 + $0xc8] sm:$0xff]   ;;  %v4346_v7 = vld [vmem:[#allocation5 + $0x150] sm:$0xff]   ;;  %s5074_s25 = scalar_lea.vmem [#allocation7], %s2802_s23  ;;  %s5145_s6 = scalar_lea.hbm %s5268_s2, %s2950_s10 }
  0x62   : > { %3047 = vmatpush3.bf16.msra.mxu0 %v3869_v2  ;;  %3606 = vmatpush3.bf16.msra.mxu1 %v4339_v1  ;;  %v3875_v8 = vld [vmem:[#allocation5 + $0xd0] sm:$0xff]   ;;  %v3876_v9 = vld [vmem:[#allocation5 + $0x118] sm:$0xff]   ;;  %v3879_v12 = vld [vmem:[#allocation5 + $0x120] sm:$0xff]   ;;  %s2614_s11 = sshll.u32 %s5074_s25, 4  ;;  %s2590_s7 = scalar_lea.sflag [#allocation4], %s4325_s9  ;;  %s5147_s11 = int_to_ptr.vmem [resolvable:$true] %s2614_s11 }
  0x63   : > { %3048 = vmatprep.subr.bf16.mxu0 %v3870_v3  ;;  %3599 = vmatprep.subr.bf16.mxu1 %v4343_v4  ;;  %v4350_v10 = vld [vmem:[#allocation5 + $0x158] sm:$0xff]   ;;  %v4354_v13 = vld [vmem:[#allocation5 + $0x160] sm:$0xff]   ;;  %v3882_v15 = vld [vmem:[#allocation5 + $0x128] sm:$0xff]   ;;  %s3997_s30 = scalar_lea.vmem %s5147_s11, 2048  ;;  %s4151_s27 = smov [#allocation7]  }
  0x64   : > { %v3878_v11 = vld [vmem:[#allocation5 + $0xd8] sm:$0xff]   ;;  %v3881_v14 = vld [vmem:[#allocation5 + $0xe0] sm:$0xff]   ;;  %v4358_v16 = vld [vmem:[#allocation5 + $0x168] sm:$0xff]   ;;  %p3998_p6 = scmp.ne.s32.totalorder %s5147_s11, %s3997_s30  ;;  %s4001_s12 = sshll.u32 %s4151_s27, 4  ;;  %s4002_s12 = int_to_ptr.vmem [resolvable:$false] %s4001_s12 }
  0x65   : > { %v3884_v17 = vld [vmem:[#allocation5 + $0xe8] sm:$0xff]   ;;  %v3885_v18 = vld [vmem:[#allocation5 + $0x130] sm:$0xff]   ;;  %v3888_v21 = vld [vmem:[#allocation5 + $0x138] sm:$0xff]   ;;  %s4003_s28 = scalar_lea.vmem %s4002_s12, 4096  ;;  %p4004_p13 = scmp.lt.s32.totalorder %s5147_s11, %s4002_s12 }
  0x66   : > { %3049 = vmatpush3.bf16.msra.mxu0 %v3872_v5  ;;  %3607 = vmatpush3.bf16.msra.mxu1 %v4343_v4  ;;  %v4362_v19 = vld [vmem:[#allocation5 + $0x170] sm:$0xff]   ;;  %v4364_v22 = vld [vmem:[#allocation5 + $0x178] sm:$0xff]   ;;  %v3891_v47 = vld [vmem:[#allocation5 + $0x40] sm:$0xff]   ;;  %p3999_p8 = pnand %p3998_p6, %p4271_p10  ;;  %p4005_p0 = scmp.lt.s32.totalorder %s4003_s28, %s3997_s30 }
  0x67   : > { %3050 = vmatprep.subr.bf16.mxu0 %v3873_v6  ;;  %3600 = vmatprep.subr.bf16.mxu1 %v4346_v7  ;;  %v3887_v20 = vld [vmem:[#allocation5 + $0xf0] sm:$0xff]   ;;  %v278_v23 = vld [vmem:[%s4329_s13 + $0x18] sm:$0xff]  ;;  %v280_v25 = vld [vmem:[%s4329_s13 + $0x28] sm:$0xff] }
  0x68   : > { %v279_v24 = vld [vmem:[%s4329_s13 + $0x20] sm:$0xff]  ;;  %v4373_v27 = vpack.c.bf16 %v280_v25, %v280_v25  ;;  %v302_v28 = vld [vmem:[%s4329_s13 + $0xd8] sm:$0xff]  ;;  %v304_v30 = vld [vmem:[%s4329_s13 + $0xe8] sm:$0xff]  ;;  %p4000_p12 = pneg %p3999_p8  ;;  %p4006_p5 = por %p4005_p0, %p4004_p13 }
  0x69   : > { %v4371_v26 = vpack.c.bf16 %v279_v24, %v278_v23  ;;  %v303_v29 = vld [vmem:[%s4329_s13 + $0xe0] sm:$0xff]  ;;  %v4380_v32 = vpack.c.bf16 %v304_v30, %v304_v30  ;;  %v305_v33 = vld [vmem:[%s4329_s13 + $0xf0] sm:$0xff]  ;;  %v306_v34 = vld [vmem:[%s4329_s13 + $0xf8] sm:$0xff] }
  0x6a   : > { %3051 = vmatpush3.bf16.msra.mxu0 %v3875_v8  ;;  %3608 = vmatpush3.bf16.msra.mxu1 %v4346_v7  ;;  %v4378_v31 = vpack.c.bf16 %v303_v29, %v302_v28  ;;  %v307_v35 = vld [vmem:[%s4329_s13 + $0x100] sm:$0xff]  ;;  %v3890_v36 = vld [vmem:[#allocation5 + $0xf8] sm:$0xff]   ;;  %v386_v39 = vshll.u32 %v4373_v27, 16  ;;  %v4388_v40 = vpack.c.bf16 %v306_v34, %v305_v33  ;;  %v3893_v52 = vld [vmem:[#allocation5 + $0x48] sm:$0xff]   ;;  %p4007_p9 = pnand %p4006_p5, %p4000_p12 }
  0x6b   : > { %3052 = vmatprep.subr.bf16.mxu0 %v3876_v9  ;;  %3601 = vmatprep.subr.bf16.mxu1 %v4350_v10  ;;  %v379_v37 = vshrl.u32 %v4371_v26, 16  ;;  %v381_v38 = vshll.u32 %v4371_v26, 16  ;;  %v635_v42 = vrot.slane %v4380_v32, 1  ;;  %v4393_v43 = vpack.c.bf16 %v307_v35, %v307_v35  ;;  %v3892_v50 = vld [vmem:[#allocation5] sm:$0xff]   ;;  %v282_v55 = vld [vmem:[%s4329_s13 + $0x38] sm:$0xff]  ;;  %v308_v60 = vld [vmem:[%s4329_s13 + $0x108] sm:$0xff] }
  0x6c   : > { %v634_v41 = vrot.slane %v4378_v31, 1  ;;  %v388_v45 = vrot.slane %v386_v39, 1  ;;  %v637_v46 = vrot.slane %v4388_v40, 1  ;;  %v281_v54 = vld [vmem:[%s4329_s13 + $0x30] sm:$0xff]  ;;  %v283_v56 = vld [vmem:[%s4329_s13 + $0x40] sm:$0xff]  ;;  %v310_v62 = vld [vmem:[%s4329_s13 + $0x118] sm:$0xff] }
  0x6d   : > { %v383_v44 = vrot.slane %v381_v38, 1  ;;  %v638_v49 = vrot.slane %v4393_v43, 1  ;;  %v4413_v58 = vpack.c.bf16 %v282_v55, %v281_v54  ;;  %v4415_v59 = vpack.c.bf16 %v283_v56, %v283_v56  ;;  %v309_v61 = vld [vmem:[%s4329_s13 + $0x110] sm:$0xff]  ;;  %v311_v2 = vld [vmem:[%s4329_s13 + $0x120] sm:$0xff]  ;;  %v312_v3 = vld [vmem:[%s4329_s13 + $0x128] sm:$0xff] }
  0x6e   : > { %3053 = vmatpush3.bf16.msra.mxu0 %v3878_v11  ;;  %3609 = vmatpush3.bf16.msra.mxu1 %v4350_v10  ;;  %v4398_v48 = vsel %vm606_vm1, %v634_v41, %v635_v42  ;;  %v4421_v63 = vpack.c.bf16 %v309_v61, %v308_v60  ;;  %v4423_v0 = vpack.c.bf16 %v310_v62, %v310_v62  ;;  %v313_v5 = vld [vmem:[%s4329_s13 + $0x130] sm:$0xff]  ;;  %v3894_v6 = vld [vmem:[#allocation5 + $0x8] sm:$0xff]   ;;  %v3897_v29 = vld [vmem:[#allocation5 + $0x58] sm:$0xff]  }
  0x6f   : > { %3054 = vmatprep.subr.bf16.mxu0 %v3879_v12  ;;  %3602 = vmatprep.subr.bf16.mxu1 %v4354_v13  ;;  %v384_v51 = vor.u32 %v383_v44, %v379_v37  ;;  %v4404_v53 = vsel %vm606_vm1, %v637_v46, %v638_v49  ;;  %v391_v8 = vshrl.u32 %v4413_v58, 16  ;;  %v393_v9 = vshll.u32 %v4413_v58, 16  ;;  %v3895_v23 = vld [vmem:[#allocation5 + $0x50] sm:$0xff]   ;;  %v284_v33 = vld [vmem:[%s4329_s13 + $0x48] sm:$0xff]  ;;  %v286_v35 = vld [vmem:[%s4329_s13 + $0x58] sm:$0xff] }
  0x70   : > { %3486 = vmatprep.mubr.bf16.mxu1 %v4398_v48  ;;  %v398_v11 = vshll.u32 %v4415_v59, 16  ;;  %v4433_v12 = vpack.c.bf16 %v312_v3, %v311_v2  ;;  %v3896_v25 = vld [vmem:[#allocation5 + $0x10] sm:$0xff]   ;;  %v4459_v38 = vpack.c.bf16 %v286_v35, %v286_v35  ;;  %v314_v39 = vld [vmem:[%s4329_s13 + $0x138] sm:$0xff]  ;;  %v316_v42 = vld [vmem:[%s4329_s13 + $0x148] sm:$0xff] }
  0x71   : > { %v4410_v57 = vsel %vm365_vm0, %v384_v51, %v388_v45  ;;  %v285_v34 = vld [vmem:[%s4329_s13 + $0x50] sm:$0xff]  ;;  %v315_v41 = vld [vmem:[%s4329_s13 + $0x140] sm:$0xff]  ;;  %v4468_v45 = vpack.c.bf16 %v316_v42, %v316_v42  ;;  %v318_v46 = vld [vmem:[%s4329_s13 + $0x158] sm:$0xff] }
  0x72   : > { %3055 = vmatpush3.bf16.msra.mxu0 %v3881_v14  ;;  %3610 = vmatpush3.bf16.msra.mxu1 %v4354_v13  ;;  %v640_v14 = vrot.slane %v4421_v63, 1  ;;  %v4457_v37 = vpack.c.bf16 %v285_v34, %v284_v33  ;;  %v4466_v44 = vpack.c.bf16 %v315_v41, %v314_v39  ;;  %v3898_v49 = vld [vmem:[#allocation5 + $0x18] sm:$0xff]   ;;  %v3899_v3 = vld [vmem:[#allocation5 + $0x60] sm:$0xff]   ;;  %v3902_v39 = vld [vmem:[#allocation5 + $0x28] sm:$0xff]  }
  0x73   : > { %3056 = vmatprep.subr.bf16.mxu0 %v3882_v15  ;;  %3603 = vmatprep.subr.bf16.mxu1 %v4358_v16  ;;  %v641_v15 = vrot.slane %v4423_v0, 1  ;;  %v647_v56 = vrot.slane %v4468_v45, 1  ;;  %v324_v34 = vld [vmem:[%s4329_s13 + $0x188] sm:$0xff]  ;;  %v325_v35 = vld [vmem:[%s4329_s13 + $0x190] sm:$0xff] }
  0x74   : > { %963 = vmatprep.mubr.bf16.mxu0 %v4410_v57  ;;  %v405_v51 = vshll.u32 %v4457_v37, 16  ;;  %v646_v55 = vrot.slane %v4466_v44, 1 }
  0x76   : > { %3057 = vmatpush3.bf16.msra.mxu0 %v3884_v17  ;;  %3611 = vmatpush3.bf16.msra.mxu1 %v4358_v16  ;;  %v4438_v17 = vpack.c.bf16 %v313_v5, %v313_v5  ;;  %v407_v61 = vrot.slane %v405_v51, 1  ;;  %v4488_v5 = vsel %vm606_vm1, %v646_v55, %v647_v56  ;;  %v3903_v56 = vld [vmem:[#allocation5 + $0x70] sm:$0xff]  }
  0x77   : > { %3058 = vmatprep.subr.bf16.mxu0 %v3885_v18  ;;  %3604 = vmatprep.subr.bf16.mxu1 %v4362_v19  ;;  %v395_v18 = vrot.slane %v393_v9, 1  ;;  %v3901_v9 = vld [vmem:[#allocation5 + $0x68] sm:$0xff]  }
  0x78   : > { %v644_v24 = vrot.slane %v4438_v17, 1 }
  0x79   : > { %v396_v28 = vor.u32 %v395_v18, %v391_v8  ;;  %v3900_v8 = vld [vmem:[#allocation5 + $0x20] sm:$0xff]  }
  0x7a   : > { %3059 = vmatpush3.bf16.msra.mxu0 %v3887_v20  ;;  %3612 = vmatpush3.bf16.msra.mxu1 %v4362_v19  ;;  %v400_v20 = vrot.slane %v398_v11, 1  ;;  %v289_v18 = vld [vmem:[%s4329_s13 + $0x70] sm:$0xff] }
  0x7b   : > { %3060 = vmatprep.subr.bf16.mxu0 %v3888_v21  ;;  %3605 = vmatprep.subr.bf16.mxu1 %v4364_v22  ;;  %v643_v21 = vrot.slane %v4433_v12, 1 }
  0x7d   : > { %v4448_v30 = vsel %vm606_vm1, %v643_v21, %v644_v24  ;;  %v320_v24 = vld [vmem:[%s4329_s13 + $0x168] sm:$0xff] }
  0x7e   : > { %3061 = vmatpush3.bf16.msra.mxu0 %v3890_v36  ;;  %3613 = vmatpush3.bf16.msra.mxu1 %v4364_v22  ;;  %v4455_v36 = vsel %vm365_vm0, %v396_v28, %v400_v20  ;;  %v322_v28 = vld [vmem:[%s4329_s13 + $0x178] sm:$0xff] }
  0x7f   : > { %3454 = vmatprep.subr.bf16.mxu0 %v4339_v1  ;;  %3182 = vmatprep.subr.bf16.mxu1 %v3891_v47  ;;  %v319_v47 = vld [vmem:[%s4329_s13 + $0x160] sm:$0xff]  ;;  %v4513_v33 = vpack.c.bf16 %v322_v28, %v322_v28  ;;  %v277_v28 = vld [vmem:[%s4329_s13 + $0x10] sm:$0xff] }
  0x80   : > { %v4482_v60 = vpack.c.bf16 %v319_v47, %v319_v47 }
  0x81   : > { %964 = vmatmul.mubr.bf16.vlgmr.msra.gmra.mrb[0].mxu0 %v4371_v26  ;;  %3487 = vmatmul.mubr.bf16.vlgmr.msra.gmra.mrb[0].mxu1 %v4404_v53 }
  0x82   : > { %3455 = vmatpush3.bf16.msra.mxu0 %v4339_v1  ;;  %3183 = vmatpush3.bf16.msra.mxu1 %v3892_v50  ;;  %v4443_v1 = vsel %vm606_vm1, %v640_v14, %v641_v15  ;;  %v403_v50 = vshrl.u32 %v4457_v37, 16  ;;  %v287_v14 = vld [vmem:[%s4329_s13 + $0x60] sm:$0xff]  ;;  %v288_v15 = vld [vmem:[%s4329_s13 + $0x68] sm:$0xff] }
  0x83   : > { %3184 = vmatprep.subr.bf16.mxu1 %v3893_v52  ;;  %3456 = vmatprep.subr.bf16.mxu0 %v4343_v4  ;;  %v410_v52 = vshll.u32 %v4459_v38, 16  ;;  %v4502_v21 = vpack.c.bf16 %v288_v15, %v287_v14 }
  0x84   : > { %3490 = vmatprep.mubr.bf16.mxu1 %v4443_v1  ;;  %971 = vmatprep.mubr.bf16.mxu0 %v4455_v36 }
  0x85   : > { %v412_v62 = vrot.slane %v410_v52, 1  ;;  %v415_v41 = vshrl.u32 %v4502_v21, 16  ;;  %v417_v42 = vshll.u32 %v4502_v21, 16 }
  0x86   : > { %3185 = vmatpush3.bf16.msra.mxu1 %v3894_v6  ;;  %3457 = vmatpush3.bf16.msra.mxu0 %v4343_v4  ;;  %v317_v4 = vld [vmem:[%s4329_s13 + $0x150] sm:$0xff]  ;;  %v650_v6 = vrot.slane %v4482_v60, 1 }
  0x87   : > { %3186 = vmatprep.subr.bf16.mxu1 %v3895_v23  ;;  %3458 = vmatprep.subr.bf16.mxu0 %v4346_v7  ;;  %v4478_v54 = vpack.c.bf16 %v318_v46, %v317_v4  ;;  %v4504_v23 = vpack.c.bf16 %v289_v18, %v289_v18  ;;  %v419_v51 = vrot.slane %v417_v42, 1  ;;  %v3907_v42 = vld [vmem:[#allocation5 + $0x80] sm:$0xff]  }
  0x89   : > { %972 = vmatmul.mubr.bf16.gmra.mrb[4].mxu0 %v4413_v58  ;;  %3491 = vmatmul.mubr.bf16.gmra.mrb[4].mxu1 %v4448_v30  ;;  %v649_v2 = vrot.slane %v4478_v54, 1  ;;  %v422_v4 = vshll.u32 %v4504_v23, 16 }
  0x8a   : > { %3187 = vmatpush3.bf16.msra.mxu1 %v3896_v25  ;;  %3459 = vmatpush3.bf16.msra.mxu0 %v4346_v7  ;;  %v408_v7 = vor.u32 %v407_v61, %v403_v50  ;;  %v321_v25 = vld [vmem:[%s4329_s13 + $0x170] sm:$0xff]  ;;  %v4527_v50 = vpack.c.bf16 %v325_v35, %v325_v35 }
  0x8b   : > { %3188 = vmatprep.subr.bf16.mxu1 %v3897_v29  ;;  %3460 = vmatprep.subr.bf16.mxu0 %v4350_v10  ;;  %v4493_v11 = vsel %vm606_vm1, %v649_v2, %v650_v6  ;;  %v4511_v29 = vpack.c.bf16 %v321_v25, %v320_v24  ;;  %v424_v52 = vrot.slane %v422_v4, 1  ;;  %v3904_v2 = vld [vmem:[#allocation5 + $0x30] sm:$0xff]   ;;  %v276_v25 = vld [vmem:[%s4329_s13 + $0x8] sm:$0xff] }
  0x8c   : > { %3494 = vmatprep.mubr.bf16.mxu1 %v4488_v5  ;;  %5290 = vst [vmem:[#allocation15_spill] sm:$0xff] %v4493_v11  ;;  %v4500_v20 = vsel %vm365_vm0, %v408_v7, %v412_v62  ;;  %v735_v62 = vrot.slane %v4527_v50, 1  ;;  %v291_v7 = vld [vmem:[%s4329_s13 + $0x80] sm:$0xff]  ;;  %v293_v4 = vld [vmem:[%s4329_s13 + $0x90] sm:$0xff] }
  0x8d   : > { %979 = vmatprep.mubr.bf16.mxu0 %v4500_v20  ;;  %v652_v47 = vrot.slane %v4511_v29, 1  ;;  %v275_v24 = vld [vmem:[%s4329_s13] sm:$0xff] }
  0x8e   : > { %3189 = vmatpush3.bf16.msra.mxu1 %v3898_v49  ;;  %3461 = vmatpush3.bf16.msra.mxu0 %v4350_v10  ;;  %v323_v10 = vld [vmem:[%s4329_s13 + $0x180] sm:$0xff]  ;;  %v653_v49 = vrot.slane %v4513_v33, 1 }
  0x8f   : > { %3190 = vmatprep.subr.bf16.mxu1 %v3899_v3  ;;  %3462 = vmatprep.subr.bf16.mxu0 %v4354_v13  ;;  %v4523_v46 = vpack.c.bf16 %v324_v34, %v323_v10  ;;  %v3905_v3 = vld [vmem:[#allocation5 + $0x78] sm:$0xff]   ;;  %v4555_v34 = vpack.c.bf16 %v276_v25, %v275_v24 }
  0x90   : > { %v4533_v61 = vsel %vm606_vm1, %v652_v47, %v653_v49  ;;  %v3906_v10 = vld [vmem:[#allocation5 + $0x38] sm:$0xff]   ;;  %v295_v49 = vld [vmem:[%s4329_s13 + $0xa0] sm:$0xff] }
  0x91   : > { %980 = vmatmul.mubr.bf16.gmra.mrb[8].mxu0 %v4457_v37  ;;  %3495 = vmatmul.mubr.bf16.gmra.mrb[8].mxu1 %v4493_v11  ;;  %v734_v55 = vrot.slane %v4523_v46, 1  ;;  %5291 = vst [vmem:[#allocation16_spill] sm:$0xff] %v4533_v61  ;;  %v294_v47 = vld [vmem:[%s4329_s13 + $0x98] sm:$0xff]  ;;  %v4577_v24 = vpack.c.bf16 %v295_v49, %v295_v49 }
  0x92   : > { %3191 = vmatpush3.bf16.msra.mxu1 %v3900_v8  ;;  %3463 = vmatpush3.bf16.msra.mxu0 %v4354_v13  ;;  %v420_v13 = vor.u32 %v419_v51, %v415_v41  ;;  %v290_v8 = vld [vmem:[%s4329_s13 + $0x78] sm:$0xff]  ;;  %v367_v51 = vshrl.u32 %v4555_v34, 16 }
  0x93   : > { %3192 = vmatprep.subr.bf16.mxu1 %v3901_v9  ;;  %3464 = vmatprep.subr.bf16.mxu0 %v4358_v16  ;;  %v4538_v6 = vsel %vm606_vm1, %v734_v55, %v735_v62  ;;  %v292_v9 = vld [vmem:[%s4329_s13 + $0x88] sm:$0xff]  ;;  %v4547_v15 = vpack.c.bf16 %v291_v7, %v290_v8  ;;  %v298_v8 = vld [vmem:[%s4329_s13 + $0xb8] sm:$0xff]  ;;  %v446_v11 = vshll.u32 %v4577_v24, 16 }
  0x94   : > { %3498 = vmatprep.mubr.bf16.mxu1 %v4533_v61  ;;  %5292 = vst [vmem:[#allocation17_spill] sm:$0xff] %v4538_v6  ;;  %v4545_v14 = vsel %vm365_vm0, %v420_v13, %v424_v52  ;;  %v4549_v18 = vpack.c.bf16 %v292_v9, %v292_v9  ;;  %v369_v52 = vshll.u32 %v4555_v34, 16  ;;  %v296_v62 = vld [vmem:[%s4329_s13 + $0xa8] sm:$0xff]  ;;  %v297_v13 = vld [vmem:[%s4329_s13 + $0xb0] sm:$0xff] }
  0x95   : > { %987 = vmatprep.mubr.bf16.mxu0 %v4545_v14  ;;  %v427_v35 = vshrl.u32 %v4547_v15, 16 }
  0x96   : > { %3193 = vmatpush3.bf16.msra.mxu1 %v3902_v39  ;;  %3465 = vmatpush3.bf16.msra.mxu0 %v4358_v16  ;;  %v4557_v16 = vpack.c.bf16 %v277_v28, %v277_v28  ;;  %v429_v39 = vshll.u32 %v4547_v15, 16  ;;  %v434_v41 = vshll.u32 %v4549_v18, 16  ;;  %v371_v25 = vrot.slane %v369_v52, 1 }
  0x97   : > { %3194 = vmatprep.subr.bf16.mxu1 %v3903_v56  ;;  %3466 = vmatprep.subr.bf16.mxu0 %v4362_v19  ;;  %v4571_v56 = vpack.c.bf16 %v294_v47, %v293_v4 }
  0x98   : > { %v374_v55 = vshll.u32 %v4557_v16, 16  ;;  %v431_v7 = vrot.slane %v429_v39, 1  ;;  %v436_v9 = vrot.slane %v434_v41, 1  ;;  %v372_v39 = vor.u32 %v371_v25, %v367_v51  ;;  %v301_v25 = vld [vmem:[%s4329_s13 + $0xd0] sm:$0xff] }
  0x99   : > { %988 = vmatmul.mubr.bf16.gmra.mrb[12].mxu0 %v4502_v21  ;;  %3499 = vmatmul.mubr.bf16.gmra.mrb[12].mxu1 %v4538_v6  ;;  %v439_v4 = vshrl.u32 %v4571_v56, 16  ;;  %v441_v47 = vshll.u32 %v4571_v56, 16  ;;  %v299_v6 = vld [vmem:[%s4329_s13 + $0xc0] sm:$0xff] }
  0x9a   : > { %3195 = vmatpush3.bf16.msra.mxu1 %v3904_v2  ;;  %3467 = vmatpush3.bf16.msra.mxu0 %v4362_v19  ;;  %v4579_v2 = vpack.c.bf16 %v297_v13, %v296_v62  ;;  %v376_v28 = vrot.slane %v374_v55, 1  ;;  %v432_v61 = vor.u32 %v431_v7, %v427_v35  ;;  %v4586_v19 = vpack.c.bf16 %v298_v8, %v298_v8  ;;  %v3908_v55 = vld [vmem:[#allocation5 + $0x88] sm:$0xff]  }
  0x9b   : > { %3196 = vmatprep.subr.bf16.mxu1 %v3905_v3  ;;  %3468 = vmatprep.subr.bf16.mxu0 %v4364_v22  ;;  %v300_v3 = vld [vmem:[%s4329_s13 + $0xc8] sm:$0xff]  ;;  %v443_v41 = vrot.slane %v441_v47, 1  ;;  %v448_v35 = vrot.slane %v446_v11, 1 }
  0x9c   : > { %v451_v49 = vshrl.u32 %v4579_v2, 16  ;;  %v453_v52 = vshll.u32 %v4579_v2, 16  ;;  %v4593_v62 = vsel %vm365_vm0, %v432_v61, %v436_v9  ;;  %v458_v13 = vshll.u32 %v4586_v19, 16 }
  0x9d   : > { %v4596_v8 = vpack.c.bf16 %v300_v3, %v299_v6  ;;  %995 = vmatprep.mubr.bf16.mxu0 %v4593_v62  ;;  %v444_v51 = vor.u32 %v443_v41, %v439_v4  ;;  %v4607_v6 = vpack.c.bf16 %v301_v25, %v301_v25  ;;  %v3914_v4 = vld [vmem:[#allocation5 + $0x1c0] sm:$0xff]   ;;  %v610_v41 = vrot.slane %v4371_v26, 1  ;;  %v3912_v25 = vld [vmem:[#allocation5 + $0xa8] sm:$0xff]  }
  0x9e   : > { %3197 = vmatpush3.bf16.msra.mxu1 %v3906_v10  ;;  %3469 = vmatpush3.bf16.msra.mxu0 %v4364_v22  ;;  %v377_v10 = vsel %vm365_vm0, %v372_v39, %v376_v28  ;;  %v455_v7 = vrot.slane %v453_v52, 1  ;;  %v460_v61 = vrot.slane %v458_v13, 1  ;;  %v3909_v28 = vld [vmem:[#allocation5 + $0x90] sm:$0xff]   ;;  %v611_v52 = vrot.slane %v4373_v27, 1 }
  0x9f   : > { %3502 = vmatprep.subr.bf16.mxu1 %v3907_v42  ;;  %1429 = vmatprep.mubr.bf16.mxu1 %v377_v10  ;;  %v4604_v22 = vsel %vm365_vm0, %v444_v51, %v448_v35  ;;  %v465_v9 = vshll.u32 %v4596_v8, 16  ;;  %v463_v47 = vshrl.u32 %v4596_v8, 16  ;;  %v470_v39 = vshll.u32 %v4607_v6, 16  ;;  %v3911_v10 = vld [vmem:[#allocation5 + $0xa0] sm:$0xff]  }
  0xa0   : > { %v456_v11 = vor.u32 %v455_v7, %v451_v49  ;;  %3318 = vmatprep.subr.bf16.mxu0 %v3914_v4  ;;  %v3910_v49 = vld [vmem:[#allocation5 + $0x98] sm:$0xff]   ;;  %v477_v13 = vshll.u32 %v4378_v31, 16  ;;  %v475_v27 = vshrl.u32 %v4378_v31, 16  ;;  %v482_v7 = vshll.u32 %v4380_v32, 16  ;;  %v3913_v32 = vld [vmem:[#allocation5 + $0xb0] sm:$0xff]  }
  0xa1   : > { %996 = vmatmul.mubr.bf16.gmra.mrb[16].mxu0 %v4547_v15  ;;  %1430 = vmatmul.mubr.bf16.vlgmr.msra.gmra.mrb[16].mxu1 %v4555_v34  ;;  %v472_v35 = vrot.slane %v470_v39, 1  ;;  %v608_v4 = vrot.slane %v4557_v16, 1 }
  0xa2   : > { %3503 = vmatpush3.bf16.msra.mxu1 %v3907_v42  ;;  %1003 = vmatprep.mubr.bf16.mxu0 %v4604_v22  ;;  %v4613_v3 = vsel %vm365_vm0, %v456_v11, %v460_v61  ;;  %v467_v42 = vrot.slane %v465_v9, 1  ;;  %v489_v11 = vshll.u32 %v4388_v40, 16  ;;  %v484_v9 = vrot.slane %v482_v7, 1 }
  0xa3   : > { %1437 = vmatprep.mubr.bf16.mxu1 %v4410_v57  ;;  %3504 = vmatprep.subr.bf16.mxu1 %v3908_v55  ;;  %v4622_v57 = vsel %vm606_vm1, %v610_v41, %v611_v52  ;;  %v3922_v52 = vld [vmem:[#allocation5 + $0xb8] sm:$0xff]  }
  0xa4   : > { %v491_v41 = vrot.slane %v489_v11, 1 }
  0xa6   : > { %3505 = vmatpush3.bf16.msra.mxu1 %v3908_v55  ;;  %v468_v55 = vor.u32 %v467_v42, %v463_v47  ;;  %v487_v47 = vshrl.u32 %v4388_v40, 16 }
  0xa7   : > { %3506 = vmatprep.subr.bf16.mxu1 %v3909_v28 }
  0xa8   : > { %v4628_v51 = vsel %vm365_vm0, %v468_v55, %v472_v35  ;;  %v492_v16 = vor.u32 %v491_v41, %v487_v47  ;;  %v4651_v35 = vld [vmem:[#allocation5 + $0x200] sm:$0xff]   ;;  %v523_v41 = vshrl.u32 %v4466_v44, 16 }
  0xa9   : > { %1004 = vmatmul.mubr.bf16.gmra.mrb[20].mxu0 %v4571_v56  ;;  %1438 = vmatmul.mubr.bf16.gmra.mrb[20].mxu1 %v4371_v26  ;;  %v479_v26 = vrot.slane %v477_v13, 1  ;;  %v499_v13 = vshrl.u32 %v4421_v63, 16 }
  0xaa   : > { %1011 = vmatprep.mubr.bf16.mxu0 %v4613_v3  ;;  %1445 = vmatprep.mubr.bf16.mxu1 %v4455_v36 }
  0xab   : > { %3507 = vmatpush3.bf16.msra.mxu1 %v3909_v28  ;;  %v480_v61 = vor.u32 %v479_v26, %v475_v27  ;;  %v607_v28 = vrot.slane %v4555_v34, 1  ;;  %v501_v34 = vshll.u32 %v4421_v63, 16  ;;  %v506_v27 = vshll.u32 %v4423_v0, 16 }
  0xac   : > { %3508 = vmatprep.subr.bf16.mxu1 %v3910_v49  ;;  %v511_v0 = vshrl.u32 %v4433_v12, 16 }
  0xad   : > { %v4640_v42 = vsel %vm606_vm1, %v607_v28, %v608_v4  ;;  %v4643_v39 = vsel %vm365_vm0, %v480_v61, %v484_v9  ;;  %v508_v7 = vrot.slane %v506_v27, 1  ;;  %v518_v9 = vshll.u32 %v4438_v17, 16 }
  0xae   : > { %v525_v4 = vshll.u32 %v4466_v44, 16  ;;  %v530_v17 = vshll.u32 %v4468_v45, 16  ;;  %v542_v45 = vshll.u32 %v4482_v60, 16  ;;  %v554_v60 = vshll.u32 %v4513_v33, 16 }
  0xaf   : > { %3509 = vmatpush3.bf16.msra.mxu1 %v3910_v49  ;;  %v494_v49 = vshll.u32 %v4393_v43, 16  ;;  %v727_v33 = vshll.u32 %v4527_v50, 16  ;;  %v613_v50 = vrot.slane %v4413_v58, 1 }
  0xb0   : > { %3510 = vmatprep.subr.bf16.mxu1 %v3911_v10 }
  0xb1   : > { %1012 = vmatmul.mubr.bf16.gmra.mrb[24].mxu0 %v4579_v2  ;;  %1446 = vmatmul.mubr.bf16.gmra.mrb[24].mxu1 %v4413_v58  ;;  %v496_v55 = vrot.slane %v494_v49, 1  ;;  %v527_v49 = vrot.slane %v525_v4, 1 }
  0xb2   : > { %1019 = vmatprep.mubr.bf16.mxu0 %v4628_v51  ;;  %1453 = vmatprep.mubr.bf16.mxu1 %v4500_v20 }
  0xb3   : > { %3511 = vmatpush3.bf16.msra.mxu1 %v3911_v10  ;;  %v4654_v43 = vsel %vm365_vm0, %v492_v16, %v496_v55  ;;  %v503_v10 = vrot.slane %v501_v34, 1  ;;  %v532_v34 = vrot.slane %v530_v17, 1  ;;  %v537_v16 = vshll.u32 %v4478_v54, 16 }
  0xb4   : > { %3512 = vmatprep.subr.bf16.mxu1 %v3912_v25 }
  0xb5   : > { %v504_v26 = vor.u32 %v503_v10, %v499_v13  ;;  %v535_v13 = vshrl.u32 %v4478_v54, 16  ;;  %v539_v10 = vrot.slane %v537_v16, 1  ;;  %v614_v16 = vrot.slane %v4415_v59, 1  ;;  %v3917_v59 = vld [vmem:[#allocation5 + $0x188] sm:$0xff]  }
  0xb7   : > { %3513 = vmatpush3.bf16.msra.mxu1 %v3912_v25  ;;  %v513_v25 = vshll.u32 %v4433_v12, 16  ;;  %v4665_v11 = vsel %vm365_vm0, %v504_v26, %v508_v7  ;;  %v540_v27 = vor.u32 %v539_v10, %v535_v13  ;;  %v544_v26 = vrot.slane %v542_v45, 1 }
  0xb8   : > { %3514 = vmatprep.subr.bf16.mxu1 %v3913_v32  ;;  %v549_v7 = vshll.u32 %v4511_v29, 16  ;;  %v616_v13 = vrot.slane %v4457_v37, 1  ;;  %v617_v10 = vrot.slane %v4459_v38, 1  ;;  %v4729_v45 = vsel %vm606_vm1, %v613_v50, %v614_v16  ;;  %v3918_v38 = vld [vmem:[#allocation5 + $0x1d0] sm:$0xff]  }
  0xb9   : > { %1020 = vmatmul.mubr.bf16.gmra.mrb[28].mxu0 %v4596_v8  ;;  %1454 = vmatmul.mubr.bf16.gmra.mrb[28].mxu1 %v4457_v37  ;;  %v515_v61 = vrot.slane %v513_v25, 1  ;;  %v4695_v25 = vsel %vm365_vm0, %v540_v27, %v544_v26  ;;  %v3915_v27 = vld [vmem:[#allocation5 + $0x180] sm:$0xff]   ;;  %v3916_v26 = vld [vmem:[#allocation5 + $0x1c8] sm:$0xff]   ;;  %v629_v50 = vrot.slane %v4586_v19, 1  ;;  %v632_v19 = vrot.slane %v4607_v6, 1 }
  0xba   : > { %1027 = vmatprep.mubr.bf16.mxu0 %v4643_v39  ;;  %1461 = vmatprep.mubr.bf16.mxu1 %v4545_v14  ;;  %v3932_v6 = vld [vmem:[#allocation5 + $0x208] sm:$0xff]  }
  0xbb   : > { %3515 = vmatpush3.bf16.msra.mxu1 %v3913_v32  ;;  %v516_v28 = vor.u32 %v515_v61, %v511_v0  ;;  %v520_v32 = vrot.slane %v518_v9, 1  ;;  %v547_v0 = vshrl.u32 %v4511_v29, 16  ;;  %v551_v61 = vrot.slane %v549_v7, 1 }
  0xbc   : > { %3516 = vmatprep.subr.bf16.mxu1 %v3922_v52  ;;  %v4732_v7 = vsel %vm606_vm1, %v616_v13, %v617_v10  ;;  %v3924_v13 = vld [vmem:[#allocation5 + $0x1a0] sm:$0xff]   ;;  %v3925_v10 = vld [vmem:[#allocation5 + $0x1e8] sm:$0xff]  }
  0xbd   : > { %v4675_v47 = vsel %vm365_vm0, %v516_v28, %v520_v32  ;;  %v552_v9 = vor.u32 %v551_v61, %v547_v0  ;;  %v556_v28 = vrot.slane %v554_v60, 1  ;;  %v722_v32 = vshll.u32 %v4523_v46, 16 }
  0xbe   : > { %v619_v0 = vrot.slane %v4502_v21, 1  ;;  %v620_v61 = vrot.slane %v4504_v23, 1  ;;  %v622_v60 = vrot.slane %v4547_v15, 1  ;;  %v3921_v23 = vld [vmem:[#allocation5 + $0x198] sm:$0xff]  }
  0xbf   : > { %3517 = vmatpush3.bf16.msra.mxu1 %v3922_v52  ;;  %v528_v52 = vor.u32 %v527_v49, %v523_v41  ;;  %v4705_v4 = vsel %vm365_vm0, %v552_v9, %v556_v28  ;;  %v720_v41 = vshrl.u32 %v4523_v46, 16  ;;  %v724_v49 = vrot.slane %v722_v32, 1  ;;  %v3919_v32 = vld [vmem:[#allocation5 + $0x190] sm:$0xff]  }
  0xc0   : > { %3550 = vmatprep.subr.bf16.mxu1 %v4651_v35  ;;  %v623_v9 = vrot.slane %v4549_v18, 1  ;;  %v4743_v28 = vsel %vm606_vm1, %v619_v0, %v620_v61  ;;  %v626_v18 = vrot.slane %v4577_v24, 1  ;;  %v3926_v24 = vld [vmem:[#allocation5 + $0x1a8] sm:$0xff]   ;;  %v3928_v61 = vld [vmem:[#allocation5 + $0x1b0] sm:$0xff]  }
  0xc1   : > { %1028 = vmatmul.mubr.bf16.gmra.mrb[32].mxu0 %v4378_v31  ;;  %1462 = vmatmul.mubr.bf16.gmra.mrb[32].mxu1 %v4502_v21  ;;  %v4685_v55 = vsel %vm365_vm0, %v528_v52, %v532_v34  ;;  %v725_v17 = vor.u32 %v724_v49, %v720_v41  ;;  %v729_v52 = vrot.slane %v727_v33, 1  ;;  %v3920_v41 = vld [vmem:[#allocation5 + $0x1d8] sm:$0xff]   ;;  %v625_v33 = vrot.slane %v4571_v56, 1 }
  0xc2   : > { %1035 = vmatprep.mubr.bf16.mxu0 %v4654_v43  ;;  %1469 = vmatprep.mubr.bf16.mxu1 %v4593_v62  ;;  %v4746_v49 = vsel %vm606_vm1, %v622_v60, %v623_v9  ;;  %v3930_v60 = vld [vmem:[#allocation5 + $0x1b8] sm:$0xff]   ;;  %v3933_v9 = vld [vmem:[#allocation5 + $0x210] sm:$0xff]  }
  0xc3   : > { %v4714_v34 = vsel %vm365_vm0, %v725_v17, %v729_v52  ;;  %v3923_v17 = vld [vmem:[#allocation5 + $0x1e0] sm:$0xff]   ;;  %v628_v52 = vrot.slane %v4579_v2, 1  ;;  %v4757_v16 = vsel %vm606_vm1, %v625_v33, %v626_v18 }
  0xc9   : > { %1036 = vmatmul.mubr.bf16.gmra.mrb[36].mxu0 %v4388_v40  ;;  %1470 = vmatmul.mubr.bf16.gmra.mrb[36].mxu1 %v4547_v15 }
  0xca   : > { %1043 = vmatprep.mubr.bf16.mxu0 %v4665_v11  ;;  %1477 = vmatprep.mubr.bf16.mxu1 %v4604_v22 }
  0xd1   : > { %1044 = vmatmul.mubr.bf16.gmra.mrb[40].mxu0 %v4421_v63  ;;  %1478 = vmatmul.mubr.bf16.gmra.mrb[40].mxu1 %v4571_v56 }
  0xd2   : > { %1051 = vmatprep.mubr.bf16.mxu0 %v4675_v47  ;;  %1485 = vmatprep.mubr.bf16.mxu1 %v4613_v3 }
  0xd9   : > { %1052 = vmatmul.mubr.bf16.gmra.mrb[44].mxu0 %v4433_v12  ;;  %1486 = vmatmul.mubr.bf16.gmra.mrb[44].mxu1 %v4579_v2 }
  0xda   : > { %1059 = vmatprep.mubr.bf16.mxu0 %v4685_v55  ;;  %1493 = vmatprep.mubr.bf16.mxu1 %v4628_v51 }
  0xe1   : > { %1060 = vmatmul.mubr.bf16.gmra.mrb[48].mxu0 %v4466_v44  ;;  %1494 = vmatmul.mubr.bf16.gmra.mrb[48].mxu1 %v4596_v8 }
  0xe2   : > { %1067 = vmatprep.mubr.bf16.mxu0 %v4695_v25  ;;  %1501 = vmatprep.mubr.bf16.mxu1 %v4643_v39 }
  0xe9   : > { %1068 = vmatmul.mubr.bf16.gmra.mrb[52].mxu0 %v4478_v54  ;;  %1502 = vmatmul.mubr.bf16.gmra.mrb[52].mxu1 %v4378_v31 }
  0xea   : > { %1075 = vmatprep.mubr.bf16.mxu0 %v4705_v4  ;;  %1509 = vmatprep.mubr.bf16.mxu1 %v4654_v43 }
  0xf1   : > { %1076 = vmatmul.mubr.bf16.gmra.mrb[56].mxu0 %v4511_v29  ;;  %1510 = vmatmul.mubr.bf16.gmra.mrb[56].mxu1 %v4388_v40 }
  0xf2   : > { %1083 = vmatprep.mubr.bf16.mxu0 %v4714_v34  ;;  %1517 = vmatprep.mubr.bf16.mxu1 %v4665_v11 }
  0xf9   : > { %1084 = vmatmul.mubr.bf16.gmra.mrb[60].mxu0 %v4523_v46  ;;  %1518 = vmatmul.mubr.bf16.gmra.mrb[60].mxu1 %v4421_v63 }
  0xfa   : > { %3470 = vmatprep.mubr.bf16.mxu0 %v4622_v57  ;;  %1525 = vmatprep.mubr.bf16.mxu1 %v4675_v47 }
 0x101   : > { %3471 = vmatmul.mubr.bf16.vlgmr.msra.gmra.mrb[64].mxu0 %v4729_v45  ;;  %1526 = vmatmul.mubr.bf16.gmra.mrb[64].mxu1 %v4433_v12 }
 0x102   : > { %3319 = vmatpush3.bf16.msra.mxu0 %v3915_v27  ;;  %3474 = vmatprep.mubr.bf16.mxu0 %v4732_v7  ;;  %v4760_v27 = vsel %vm606_vm1, %v628_v52, %v629_v50 }
 0x103   : > { %3320 = vmatprep.subr.bf16.mxu0 %v3916_v26  ;;  %1533 = vmatprep.mubr.bf16.mxu1 %v4685_v55  ;;  %v631_v26 = vrot.slane %v4596_v8, 1 }
 0x105   : > { %v4769_v0 = vsel %vm606_vm1, %v631_v26, %v632_v19  ;;  %v326_v19 = vld [vmem:[%s4329_s13 + $0x198] sm:$0xff] }
 0x106   : > { %3321 = vmatpush3.bf16.msra.mxu0 %v3917_v59  ;;  %v3927_v59 = vld [vmem:[#allocation5 + $0x1f0] sm:$0xff]  }
 0x107   : > { %3322 = vmatprep.subr.bf16.mxu0 %v3918_v38  ;;  %v3929_v38 = vld [vmem:[#allocation5 + $0x1f8] sm:$0xff]  }
 0x109   : > { %3475 = vmatmul.mubr.bf16.gmra.mrb[68].mxu0 %v4743_v28  ;;  %1534 = vmatmul.mubr.bf16.gmra.mrb[68].mxu1 %v4466_v44 }
 0x10a   : > { %3323 = vmatpush3.bf16.msra.mxu0 %v3919_v32  ;;  %3478 = vmatprep.mubr.bf16.mxu0 %v4746_v49  ;;  %v3934_v32 = vld [vmem:[#allocation5 + $0x218] sm:$0xff]  }
 0x10b   : > { %3324 = vmatprep.subr.bf16.mxu0 %v3920_v41  ;;  %1541 = vmatprep.mubr.bf16.mxu1 %v4695_v25 }
 0x10e   : > { %3325 = vmatpush3.bf16.msra.mxu0 %v3921_v23 }
 0x10f   : > { %3326 = vmatprep.subr.bf16.mxu0 %v3923_v17 }
 0x111   : > { %3479 = vmatmul.mubr.bf16.gmra.mrb[72].mxu0 %v4757_v16  ;;  %1542 = vmatmul.mubr.bf16.gmra.mrb[72].mxu1 %v4478_v54 }
 0x112   : > { %3327 = vmatpush3.bf16.msra.mxu0 %v3924_v13  ;;  %3482 = vmatprep.mubr.bf16.mxu0 %v4760_v27 }
 0x113   : > { %3328 = vmatprep.subr.bf16.mxu0 %v3925_v10  ;;  %1549 = vmatprep.mubr.bf16.mxu1 %v4705_v4 }
 0x116   : > { %3329 = vmatpush3.bf16.msra.mxu0 %v3926_v24 }
 0x117   : > { %3330 = vmatprep.subr.bf16.mxu0 %v3927_v59  ;;  %v327_v59 = vld [vmem:[%s4329_s13 + $0x1a0] sm:$0xff] }
 0x119   : > { %3483 = vmatmul.mubr.bf16.gmra.mrb[76].mxu0 %v4769_v0  ;;  %1550 = vmatmul.mubr.bf16.gmra.mrb[76].mxu1 %v4511_v29 }
 0x11a   : > { %3331 = vmatpush3.bf16.msra.mxu0 %v3928_v61  ;;  %3518 = vmatprep.mubr.bf16.mxu1 %v4640_v42 }
 0x11b   : > { %3332 = vmatprep.subr.bf16.mxu0 %v3929_v38  ;;  %1963 = vmatprep.mubr.bf16.mxu0 %v4455_v36  ;;  %v3936_v36 = vld [vmem:[#allocation5 + $0x228] sm:$0xff]  }
 0x11e   : > { %3333 = vmatpush3.bf16.msra.mxu0 %v3930_v60 }
 0x121   : > { %1964 = vmatmul.mubr.bf16.vlgmr.msra.gmra.mrb[80].mxu0 %v4413_v58  ;;  %3519 = vmatmul.mubr.bf16.vlgmr.msra.gmra.mrb[80].mxu1 %v4622_v57  ;;  %v3935_v58 = vld [vmem:[#allocation5 + $0x220] sm:$0xff]  }
 0x122   : > { %1971 = vmatprep.mubr.bf16.mxu0 %v4500_v20  ;;  %3551 = vmatpush3.bf16.msra.mxu1 %v4651_v35  ;;  %v3938_v20 = vld [vmem:[#allocation5 + $0x238] sm:$0xff]  }
 0x123   : > { %3522 = vmatprep.mubr.bf16.mxu1 %v4729_v45  ;;  %3552 = vmatprep.subr.bf16.mxu1 %v3932_v6 }
 0x126   : > { %3553 = vmatpush3.bf16.msra.mxu1 %v3932_v6 }
 0x127   : > { %3554 = vmatprep.subr.bf16.mxu1 %v3933_v9 }
 0x129   : > { %1972 = vmatmul.mubr.bf16.gmra.mrb[84].mxu0 %v4457_v37  ;;  %3523 = vmatmul.mubr.bf16.gmra.mrb[84].mxu1 %v4732_v7  ;;  %v3937_v37 = vld [vmem:[#allocation5 + $0x230] sm:$0xff]  }
 0x12a   : > { %1979 = vmatprep.mubr.bf16.mxu0 %v4545_v14  ;;  %3526 = vmatprep.mubr.bf16.mxu1 %v4743_v28 }
 0x12b   : > { %3555 = vmatpush3.bf16.msra.mxu1 %v3933_v9 }
 0x12c   : > { %3556 = vmatprep.subr.bf16.mxu1 %v3934_v32 }
 0x12f   : > { %3557 = vmatpush3.bf16.msra.mxu1 %v3934_v32 }
 0x130   : > { %3558 = vmatprep.subr.bf16.mxu1 %v3935_v58 }
 0x131   : > { %1980 = vmatmul.mubr.bf16.gmra.mrb[88].mxu0 %v4502_v21  ;;  %3527 = vmatmul.mubr.bf16.gmra.mrb[88].mxu1 %v4746_v49  ;;  %v5293_v21 = vld [vmem:[#allocation15_spill] sm:$0xff] }
 0x132   : > { %1987 = vmatprep.mubr.bf16.mxu0 %v4593_v62  ;;  %3530 = vmatprep.mubr.bf16.mxu1 %v4757_v16 }
 0x133   : > { %3559 = vmatpush3.bf16.msra.mxu1 %v3935_v58  ;;  %v4854_v58 = vpack.c.bf16 %v327_v59, %v326_v19 }
 0x134   : > { %3560 = vmatprep.subr.bf16.mxu1 %v3936_v36 }
 0x137   : > { %3561 = vmatpush3.bf16.msra.mxu1 %v3936_v36  ;;  %v328_v36 = vld [vmem:[%s4329_s13 + $0x1a8] sm:$0xff] }
 0x138   : > { %3562 = vmatprep.subr.bf16.mxu1 %v3937_v37 }
 0x139   : > { %1988 = vmatmul.mubr.bf16.gmra.mrb[92].mxu0 %v4547_v15  ;;  %3531 = vmatmul.mubr.bf16.gmra.mrb[92].mxu1 %v4760_v27 }
 0x13a   : > { %1995 = vmatprep.mubr.bf16.mxu0 %v4604_v22  ;;  %3534 = vmatprep.mubr.bf16.mxu1 %v4769_v0 }
 0x13b   : > { %3563 = vmatpush3.bf16.msra.mxu1 %v3937_v37  ;;  %v364_v37 = vpack.c.bf16 %v328_v36, %v328_v36 }
 0x13c   : > { %3564 = vmatprep.subr.bf16.mxu1 %v3938_v20 }
 0x13f   : > { %3565 = vmatpush3.bf16.msra.mxu1 %v3938_v20  ;;  %v1722_v20 = vshll.u32 %v4854_v58, 16 }
 0x141   : > { %1996 = vmatmul.mubr.bf16.gmra.mrb[96].mxu0 %v4571_v56  ;;  %3535 = vmatmul.mubr.bf16.gmra.mrb[0].mxu1 %v4398_v48 }
 0x142   : > { %2003 = vmatprep.mubr.bf16.mxu0 %v4613_v3  ;;  %3538 = vmatprep.mubr.bf16.mxu1 %v4404_v53  ;;  %v5294_v3 = vld [vmem:[#allocation16_spill] sm:$0xff] }
 0x149   : > { %2004 = vmatmul.mubr.bf16.gmra.mrb[100].mxu0 %v4579_v2  ;;  %3539 = vmatmul.mubr.bf16.gmra.mrb[4].mxu1 %v4443_v1 }
 0x14a   : > { %2011 = vmatprep.mubr.bf16.mxu0 %v4628_v51  ;;  %3542 = vmatprep.mubr.bf16.mxu1 %v4448_v30 }
 0x151   : > { %2012 = vmatmul.mubr.bf16.gmra.mrb[104].mxu0 %v4596_v8  ;;  %3543 = vmatmul.mubr.bf16.gmra.mrb[8].mxu1 %v4488_v5 }
 0x152   : > { %2019 = vmatprep.mubr.bf16.mxu0 %v4643_v39  ;;  %3546 = vmatprep.mubr.bf16.mxu1 %v5293_v21 }
 0x154   : > { %v3062_v14 = vpop.f32.mrb[0].mxu0 }
 0x155   : > { %v3063_v15 = vpop.f32.mrb[1].mxu0 }
 0x156   : > { %v4804_v56 = vadd.f32 %v3063_v15, %v3062_v14  ;;  %v3065_v62 = vpop.f32.mrb[2].mxu0 }
 0x157   : > { %v3066_v2 = vpop.f32.mrb[3].mxu0 }
 0x158   : > { %v4806_v22 = vadd.f32 %v3066_v2, %v3065_v62 }
 0x159   : > { %2020 = vmatmul.mubr.bf16.gmra.mrb[108].mxu0 %v4378_v31  ;;  %3547 = vmatmul.mubr.bf16.gmra.mrb[12].mxu1 %v5294_v3 }
 0x15a   : > { %2027 = vmatprep.mubr.bf16.mxu0 %v4654_v43  ;;  %3566 = vmatprep.mubr.bf16.mxu1 %v4729_v45 }
 0x15c   : > { %v3068_v8 = vpop.f32.mrb[4].mxu0 }
 0x15d   : > { %v3069_v57 = vpop.f32.mrb[5].mxu0 }
 0x15e   : > { %v4812_v51 = vadd.f32 %v3069_v57, %v3068_v8  ;;  %v3071_v42 = vpop.f32.mrb[6].mxu0 }
 0x15f   : > { %v3072_v39 = vpop.f32.mrb[7].mxu0 }
 0x160   : > { %v4814_v35 = vadd.f32 %v3072_v39, %v3071_v42 }
 0x161   : > { %2028 = vmatmul.mubr.bf16.gmra.mrb[112].mxu0 %v4388_v40  ;;  %3567 = vmatmul.mubr.bf16.vlgmr.msra.gmra.mrb[80].mxu1 %v4732_v7 }
 0x162   : > { %2035 = vmatprep.mubr.bf16.mxu0 %v4665_v11  ;;  %3570 = vmatprep.mubr.bf16.mxu1 %v4743_v28 }
 0x164   : > { %v3074_v31 = vpop.f32.mrb[8].mxu0 }
 0x165   : > { %v3075_v43 = vpop.f32.mrb[9].mxu0 }
 0x166   : > { %v4820_v41 = vadd.f32 %v3075_v43, %v3074_v31  ;;  %v3077_v45 = vpop.f32.mrb[10].mxu0  ;;  %v1724_v31 = vrot.slane %v1722_v20, 1 }
 0x167   : > { %v3078_v23 = vpop.f32.mrb[11].mxu0 }
 0x168   : > { %v4822_v33 = vadd.f32 %v3078_v23, %v3077_v45 }
 0x169   : > { %2036 = vmatmul.mubr.bf16.gmra.mrb[116].mxu0 %v4421_v63  ;;  %3571 = vmatmul.mubr.bf16.gmra.mrb[84].mxu1 %v4746_v49 }
 0x16a   : > { %2043 = vmatprep.mubr.bf16.mxu0 %v4675_v47  ;;  %3574 = vmatprep.mubr.bf16.mxu1 %v4757_v16 }
 0x16c   : > { %v3080_v40 = vpop.f32.mrb[12].mxu0 }
 0x16d   : > { %v3081_v11 = vpop.f32.mrb[13].mxu0 }
 0x16e   : > { %v4828_v7 = vadd.f32 %v3081_v11, %v3080_v40  ;;  %v3083_v28 = vpop.f32.mrb[14].mxu0 }
 0x16f   : > { %v3084_v18 = vpop.f32.mrb[15].mxu0 }
 0x170   : > { %v4830_v17 = vadd.f32 %v3084_v18, %v3083_v28 }
 0x171   : > { %2044 = vmatmul.mubr.bf16.gmra.mrb[120].mxu0 %v4433_v12  ;;  %3575 = vmatmul.mubr.bf16.gmra.mrb[88].mxu1 %v4760_v27 }
 0x172   : > { %2051 = vmatprep.mubr.bf16.mxu0 %v4685_v55  ;;  %3578 = vmatprep.mubr.bf16.mxu1 %v4769_v0 }
 0x174   : > { %v3086_v63 = vpop.f32.mrb[16].mxu0  ;;  %v3198_v47 = vpop.f32.mrb[16].mxu1 }
 0x175   : > { %v3087_v49 = vpop.f32.mrb[17].mxu0  ;;  %v3199_v50 = vpop.f32.mrb[17].mxu1 }
 0x176   : > { %v4836_v52 = vadd.f32 %v3087_v49, %v3086_v63  ;;  %v3089_v16 = vpop.f32.mrb[18].mxu0  ;;  %v4838_v13 = vadd.f32 %v3199_v50, %v3198_v47  ;;  %v3201_v10 = vpop.f32.mrb[18].mxu1 }
 0x177   : > { %v3090_v24 = vpop.f32.mrb[19].mxu0  ;;  %v3202_v27 = vpop.f32.mrb[19].mxu1 }
 0x178   : > { %v4840_v12 = vadd.f32 %v3090_v24, %v3089_v16  ;;  %v4842_v26 = vadd.f32 %v3202_v27, %v3201_v10  ;;  %v1734_v27 = vrot.slane %v4854_v58, 1 }
 0x179   : > { %2052 = vmatmul.mubr.bf16.gmra.mrb[124].mxu0 %v4466_v44  ;;  %3579 = vmatmul.mubr.bf16.gmra.mrb[92].mxu1 %v4398_v48 }
 0x17a   : > { %2059 = vmatprep.mubr.bf16.mxu0 %v4695_v25  ;;  %3582 = vmatprep.mubr.bf16.mxu1 %v4404_v53 }
 0x17c   : > { %v3092_v55 = vpop.f32.mrb[20].mxu0  ;;  %v3204_v0 = vpop.f32.mrb[20].mxu1 }
 0x17d   : > { %v3093_v61 = vpop.f32.mrb[21].mxu0  ;;  %v3205_v60 = vpop.f32.mrb[21].mxu1 }
 0x17e   : > { %v4850_v38 = vadd.f32 %v3093_v61, %v3092_v55  ;;  %v3095_v6 = vpop.f32.mrb[22].mxu0  ;;  %v4852_v9 = vadd.f32 %v3205_v60, %v3204_v0  ;;  %v3207_v32 = vpop.f32.mrb[22].mxu1  ;;  %v1735_v55 = vrot.slane %v364_v37, 1 }
 0x17f   : > { %v3096_v44 = vpop.f32.mrb[23].mxu0  ;;  %v3208_v25 = vpop.f32.mrb[23].mxu1 }
 0x180   : > { %v4856_v48 = vadd.f32 %v3096_v44, %v3095_v6  ;;  %v4859_v53 = vadd.f32 %v3208_v25, %v3207_v32 }
 0x181   : > { %2060 = vmatmul.mubr.bf16.gmra.mrb[128].mxu0 %v4478_v54  ;;  %3583 = vmatmul.mubr.bf16.gmra.mrb[0].mxu1 %v4443_v1  ;;  %v1720_v1 = vshrl.u32 %v4854_v58, 16 }
 0x182   : > { %2067 = vmatprep.mubr.bf16.mxu0 %v4705_v4  ;;  %3586 = vmatprep.mubr.bf16.mxu1 %v4448_v30  ;;  %v1727_v4 = vshll.u32 %v364_v37, 16 }
 0x183   : > { %v1725_v23 = vor.u32 %v1724_v31, %v1720_v1 }
 0x184   : > { %v3098_v14 = vpop.f32.mrb[24].mxu0  ;;  %v3210_v15 = vpop.f32.mrb[24].mxu1  ;;  %v1729_v40 = vrot.slane %v1727_v4, 1 }
 0x185   : > { %v3099_v62 = vpop.f32.mrb[25].mxu0  ;;  %v3211_v8 = vpop.f32.mrb[25].mxu1 }
 0x186   : > { %v4866_v2 = vadd.f32 %v3099_v62, %v3098_v14  ;;  %v3101_v57 = vpop.f32.mrb[26].mxu0  ;;  %v4868_v42 = vadd.f32 %v3211_v8, %v3210_v15  ;;  %v3213_v39 = vpop.f32.mrb[26].mxu1 }
 0x187   : > { %v3102_v54 = vpop.f32.mrb[27].mxu0  ;;  %v3214_v30 = vpop.f32.mrb[27].mxu1 }
 0x188   : > { %v4871_v43 = vadd.f32 %v3102_v54, %v3101_v57  ;;  %v4873_v45 = vadd.f32 %v3214_v30, %v3213_v39 }
 0x189   : > { %2068 = vmatmul.mubr.bf16.gmra.mrb[132].mxu0 %v4511_v29  ;;  %3587 = vmatmul.mubr.bf16.gmra.mrb[4].mxu1 %v4488_v5  ;;  %v1730_v29 = vsel %vm365_vm0, %v1725_v23, %v1729_v40 }
 0x18a   : > { %2075 = vmatprep.mubr.bf16.mxu0 %v4714_v34  ;;  %3590 = vmatprep.mubr.bf16.mxu1 %v5293_v21  ;;  %v5295_v21 = vld [vmem:[#allocation17_spill] sm:$0xff] }
 0x18c   : > { %v3104_v11 = vpop.f32.mrb[28].mxu0  ;;  %v3216_v28 = vpop.f32.mrb[28].mxu1 }
 0x18d   : > { %v3105_v18 = vpop.f32.mrb[29].mxu0  ;;  %v3217_v47 = vpop.f32.mrb[29].mxu1 }
 0x18e   : > { %v4879_v63 = vadd.f32 %v3105_v18, %v3104_v11  ;;  %v3107_v49 = vpop.f32.mrb[30].mxu0  ;;  %v4881_v50 = vadd.f32 %v3217_v47, %v3216_v28  ;;  %v3219_v16 = vpop.f32.mrb[30].mxu1 }
 0x18f   : > { %v3108_v10 = vpop.f32.mrb[31].mxu0  ;;  %v3220_v34 = vpop.f32.mrb[31].mxu1 }
 0x190   : > { %v4884_v5 = vadd.f32 %v3108_v10, %v3107_v49  ;;  %v4886_v24 = vadd.f32 %v3220_v34, %v3219_v16 }
 0x191   : > { %2076 = vmatmul.mubr.bf16.gmra.mrb[136].mxu0 %v4523_v46  ;;  %3591 = vmatmul.mubr.bf16.gmra.mrb[8].mxu1 %v5294_v3  ;;  %v1736_v46 = vsel %vm606_vm1, %v1734_v27, %v1735_v55 }
 0x192   : > { %2083 = vmatprep.mubr.bf16.mxu0 %v1730_v29  ;;  %3594 = vmatprep.mubr.bf16.mxu1 %v5295_v21 }
 0x194   : > { %v3110_v19 = vpop.f32.mrb[32].mxu0  ;;  %v3222_v59 = vpop.f32.mrb[32].mxu1 }
 0x195   : > { %v3111_v0 = vpop.f32.mrb[33].mxu0  ;;  %v3223_v60 = vpop.f32.mrb[33].mxu1 }
 0x196   : > { %v3112_v61 = vadd.f32 %v3111_v0, %v3110_v19  ;;  %v3113_v6 = vpop.f32.mrb[34].mxu0  ;;  %v4892_v32 = vadd.f32 %v3223_v60, %v3222_v59  ;;  %v3225_v44 = vpop.f32.mrb[34].mxu1 }
 0x197   : > { %v3114_v25 = vpop.f32.mrb[35].mxu0  ;;  %v3226_v3 = vpop.f32.mrb[35].mxu1 }
 0x198   : > { %v3115_v36 = vadd.f32 %v3114_v25, %v3113_v6  ;;  %v4895_v20 = vadd.f32 %v3226_v3, %v3225_v44 }
 0x199   : > { %2084 = vmatmul.mubr.bf16.gmra.mrb[140].mxu0 %v4854_v58  ;;  %3595 = vmatmul.mubr.bf16.gmra.mrb[12].mxu1 %v1736_v46 }
 0x19c   : > { %v3116_v37 = vpop.f32.mrb[36].mxu0  ;;  %v3228_v14 = vpop.f32.mrb[36].mxu1 }
 0x19d   : > { %v3117_v15 = vpop.f32.mrb[37].mxu0  ;;  %v3229_v8 = vpop.f32.mrb[37].mxu1 }
 0x19e   : > { %v3118_v62 = vadd.f32 %v3117_v15, %v3116_v37  ;;  %v3119_v57 = vpop.f32.mrb[38].mxu0  ;;  %v4898_v39 = vadd.f32 %v3229_v8, %v3228_v14  ;;  %v3231_v54 = vpop.f32.mrb[38].mxu1 }
 0x19f   : > { %v3120_v1 = vpop.f32.mrb[39].mxu0  ;;  %v3232_v4 = vpop.f32.mrb[39].mxu1 }
 0x1a0   : > { %v3121_v31 = vadd.f32 %v3120_v1, %v3119_v57  ;;  %v4900_v30 = vadd.f32 %v3232_v4, %v3231_v54 }
 0x1a4   : > { %v3122_v23 = vpop.f32.mrb[40].mxu0  ;;  %v3234_v40 = vpop.f32.mrb[40].mxu1 }
 0x1a5   : > { %v3123_v11 = vpop.f32.mrb[41].mxu0  ;;  %v3235_v58 = vpop.f32.mrb[41].mxu1 }
 0x1a6   : > { %v3124_v28 = vadd.f32 %v3123_v11, %v3122_v23  ;;  %v3125_v18 = vpop.f32.mrb[42].mxu0  ;;  %v4902_v47 = vadd.f32 %v3235_v58, %v3234_v40  ;;  %v3237_v49 = vpop.f32.mrb[42].mxu1 }
 0x1a7   : > { %v3126_v16 = vpop.f32.mrb[43].mxu0  ;;  %v3238_v29 = vpop.f32.mrb[43].mxu1 }
 0x1a8   : > { %v3127_v10 = vadd.f32 %v3126_v16, %v3125_v18  ;;  %v4904_v34 = vadd.f32 %v3238_v29, %v3237_v49 }
 0x1ac   : > { %v3128_v21 = vpop.f32.mrb[44].mxu0  ;;  %v3240_v27 = vpop.f32.mrb[44].mxu1 }
 0x1ad   : > { %v3129_v55 = vpop.f32.mrb[45].mxu0  ;;  %v3241_v59 = vpop.f32.mrb[45].mxu1 }
 0x1ae   : > { %v3130_v19 = vadd.f32 %v3129_v55, %v3128_v21  ;;  %v3131_v0 = vpop.f32.mrb[46].mxu0  ;;  %v4906_v60 = vadd.f32 %v3241_v59, %v3240_v27  ;;  %v3243_v6 = vpop.f32.mrb[46].mxu1 }
 0x1af   : > { %v3132_v44 = vpop.f32.mrb[47].mxu0  ;;  %v3244_v46 = vpop.f32.mrb[47].mxu1 }
 0x1b0   : > { %v3133_v25 = vadd.f32 %v3132_v44, %v3131_v0  ;;  %v4908_v3 = vadd.f32 %v3244_v46, %v3243_v6 }
 0x1b4   : > { %v3134_v37 = vpop.f32.mrb[48].mxu0  ;;  %v3246_v14 = vpop.f32.mrb[48].mxu1 }
 0x1b5   : > { %v3135_v15 = vpop.f32.mrb[49].mxu0  ;;  %v3247_v57 = vpop.f32.mrb[49].mxu1 }
 0x1b6   : > { %v4910_v8 = vadd.f32 %v3135_v15, %v3134_v37  ;;  %v3137_v54 = vpop.f32.mrb[50].mxu0  ;;  %v3248_v1 = vadd.f32 %v3247_v57, %v3246_v14  ;;  %v3249_v4 = vpop.f32.mrb[50].mxu1 }
 0x1b7   : > { %v3138_v23 = vpop.f32.mrb[51].mxu0  ;;  %v3250_v11 = vpop.f32.mrb[51].mxu1 }
 0x1b8   : > { %v4912_v40 = vadd.f32 %v3138_v23, %v3137_v54  ;;  %v4914_v58 = vadd.f32 %v3248_v1, %v3112_v61  ;;  %v3251_v18 = vadd.f32 %v3250_v11, %v3249_v4 }
 0x1ba   : > { %v4916_v49 = vadd.f32 %v3251_v18, %v3115_v36 }
 0x1bc   : > { %v3140_v16 = vpop.f32.mrb[52].mxu0  ;;  %v3252_v29 = vpop.f32.mrb[52].mxu1 }
 0x1bd   : > { %v3141_v21 = vpop.f32.mrb[53].mxu0  ;;  %v3253_v55 = vpop.f32.mrb[53].mxu1 }
 0x1be   : > { %v4918_v27 = vadd.f32 %v3141_v21, %v3140_v16  ;;  %v3143_v59 = vpop.f32.mrb[54].mxu0  ;;  %v3254_v0 = vadd.f32 %v3253_v55, %v3252_v29  ;;  %v3255_v6 = vpop.f32.mrb[54].mxu1 }
 0x1bf   : > { %v3144_v44 = vpop.f32.mrb[55].mxu0  ;;  %v3256_v37 = vpop.f32.mrb[55].mxu1 }
 0x1c0   : > { %v4920_v46 = vadd.f32 %v3144_v44, %v3143_v59  ;;  %v4922_v14 = vadd.f32 %v3254_v0, %v3118_v62  ;;  %v3257_v61 = vadd.f32 %v3256_v37, %v3255_v6 }
 0x1c2   : > { %v4924_v15 = vadd.f32 %v3257_v61, %v3121_v31 }
 0x1c4   : > { %v3146_v36 = vpop.f32.mrb[56].mxu0  ;;  %v3258_v57 = vpop.f32.mrb[56].mxu1 }
 0x1c5   : > { %v3147_v54 = vpop.f32.mrb[57].mxu0  ;;  %v3259_v4 = vpop.f32.mrb[57].mxu1 }
 0x1c6   : > { %v4926_v1 = vadd.f32 %v3147_v54, %v3146_v36  ;;  %v3149_v23 = vpop.f32.mrb[58].mxu0  ;;  %v3260_v11 = vadd.f32 %v3259_v4, %v3258_v57  ;;  %v3261_v18 = vpop.f32.mrb[58].mxu1 }
 0x1c7   : > { %v3150_v16 = vpop.f32.mrb[59].mxu0  ;;  %v3262_v21 = vpop.f32.mrb[59].mxu1 }
 0x1c8   : > { %v4928_v29 = vadd.f32 %v3150_v16, %v3149_v23  ;;  %v4930_v55 = vadd.f32 %v3260_v11, %v3124_v28  ;;  %v3263_v62 = vadd.f32 %v3262_v21, %v3261_v18 }
 0x1ca   : > { %v4932_v59 = vadd.f32 %v3263_v62, %v3127_v10 }
 0x1cc   : > { %5296 = vst [vmem:[#allocation15_spill] sm:$0xff] %v4932_v59  ;;  %v3152_v31 = vpop.f32.mrb[60].mxu0  ;;  %v3264_v0 = vpop.f32.mrb[60].mxu1 }
 0x1cd   : > { %v3153_v6 = vpop.f32.mrb[61].mxu0  ;;  %v3265_v37 = vpop.f32.mrb[61].mxu1 }
 0x1ce   : > { %v4934_v44 = vadd.f32 %v3153_v6, %v3152_v31  ;;  %v3155_v61 = vpop.f32.mrb[62].mxu0  ;;  %v3266_v36 = vadd.f32 %v3265_v37, %v3264_v0  ;;  %v3267_v54 = vpop.f32.mrb[62].mxu1 }
 0x1cf   : > { %v3156_v57 = vpop.f32.mrb[63].mxu0  ;;  %v3268_v23 = vpop.f32.mrb[63].mxu1 }
 0x1d0   : > { %v4936_v4 = vadd.f32 %v3156_v57, %v3155_v61  ;;  %v4938_v16 = vadd.f32 %v3266_v36, %v3130_v19  ;;  %v3269_v28 = vadd.f32 %v3268_v23, %v3267_v54 }
 0x1d2   : > { %v4940_v11 = vadd.f32 %v3269_v28, %v3133_v25 }
 0x1d4   : > { %v3472_v10 = vpop.f32.mrb[64].mxu0  ;;  %v3270_v21 = vpop.f32.mrb[64].mxu1 }
 0x1d5   : > { %v1135_v18 = vadd.f32 %v3472_v10, %v4812_v51  ;;  %v1126_v62 = vpop.f32.mrb[65].mxu0  ;;  %v3271_v6 = vpop.f32.mrb[65].mxu1 }
 0x1d6   : > { %v1127_v31 = vadd.f32 %v4804_v56, %v1126_v62  ;;  %v3473_v59 = vpop.f32.mrb[66].mxu0  ;;  %v3272_v37 = vadd.f32 %v3271_v6, %v3270_v21  ;;  %v3273_v19 = vpop.f32.mrb[66].mxu1 }
 0x1d7   : > { %v4945_v0 = vadd.f32 %v4852_v9, %v1135_v18  ;;  %v1138_v61 = vadd.f32 %v3473_v59, %v4814_v35  ;;  %v1129_v36 = vpop.f32.mrb[67].mxu0  ;;  %v3274_v51 = vpop.f32.mrb[67].mxu1 }
 0x1d8   : > { %v4949_v25 = vadd.f32 %v4838_v13, %v1127_v31  ;;  %v1130_v54 = vadd.f32 %v4806_v22, %v1129_v36  ;;  %v4953_v57 = vadd.f32 %v3272_v37, %v4910_v8  ;;  %v3275_v23 = vadd.f32 %v3274_v51, %v3273_v19 }
 0x1d9   : > { %v4956_v56 = vadd.f32 %v4859_v53, %v1138_v61 }
 0x1da   : > { %v4959_v9 = vadd.f32 %v4842_v26, %v1130_v54  ;;  %v4962_v35 = vadd.f32 %v3275_v23, %v4912_v40 }
 0x1dc   : > { %v3476_v59 = vpop.f32.mrb[68].mxu0  ;;  %v3276_v28 = vpop.f32.mrb[68].mxu1 }
 0x1dd   : > { %v1151_v13 = vadd.f32 %v3476_v59, %v4828_v7  ;;  %v1142_v10 = vpop.f32.mrb[69].mxu0  ;;  %v3277_v18 = vpop.f32.mrb[69].mxu1 }
 0x1de   : > { %v1143_v22 = vadd.f32 %v4820_v41, %v1142_v10  ;;  %v3477_v8 = vpop.f32.mrb[70].mxu0  ;;  %v3278_v53 = vadd.f32 %v3277_v18, %v3276_v28  ;;  %v3279_v26 = vpop.f32.mrb[70].mxu1 }
 0x1df   : > { %v4967_v21 = vadd.f32 %v4881_v50, %v1151_v13  ;;  %v1154_v62 = vadd.f32 %v3477_v8, %v4830_v17  ;;  %v1145_v31 = vpop.f32.mrb[71].mxu0  ;;  %v3280_v7 = vpop.f32.mrb[71].mxu1 }
 0x1e0   : > { %v4971_v40 = vadd.f32 %v4868_v42, %v1143_v22  ;;  %v1146_v6 = vadd.f32 %v4822_v33, %v1145_v31  ;;  %v4975_v37 = vadd.f32 %v3278_v53, %v4918_v27  ;;  %v3281_v61 = vadd.f32 %v3280_v7, %v3279_v26 }
 0x1e1   : > { %v4978_v41 = vadd.f32 %v4886_v24, %v1154_v62 }
 0x1e2   : > { %v4981_v50 = vadd.f32 %v4873_v45, %v1146_v6  ;;  %v4984_v17 = vadd.f32 %v3281_v61, %v4920_v46 }
 0x1e4   : > { %v3480_v19 = vpop.f32.mrb[72].mxu0  ;;  %v3282_v36 = vpop.f32.mrb[72].mxu1 }
 0x1e5   : > { %v1167_v42 = vadd.f32 %v3480_v19, %v4850_v38  ;;  %v1158_v54 = vpop.f32.mrb[73].mxu0  ;;  %v3283_v51 = vpop.f32.mrb[73].mxu1 }
 0x1e6   : > { %v1159_v33 = vadd.f32 %v4836_v52, %v1158_v54  ;;  %v3481_v27 = vpop.f32.mrb[74].mxu0  ;;  %v3284_v24 = vadd.f32 %v3283_v51, %v3282_v36  ;;  %v3285_v45 = vpop.f32.mrb[74].mxu1 }
 0x1e7   : > { %v4989_v23 = vadd.f32 %v4898_v39, %v1167_v42  ;;  %v1170_v59 = vadd.f32 %v3481_v27, %v4856_v48  ;;  %v1161_v13 = vpop.f32.mrb[75].mxu0  ;;  %v3286_v38 = vpop.f32.mrb[75].mxu1 }
 0x1e8   : > { %v4993_v46 = vadd.f32 %v4892_v32, %v1159_v33  ;;  %v1162_v28 = vadd.f32 %v4840_v12, %v1161_v13  ;;  %v4997_v10 = vadd.f32 %v3284_v24, %v4926_v1  ;;  %v3287_v22 = vadd.f32 %v3286_v38, %v3285_v45 }
 0x1e9   : > { %v5000_v52 = vadd.f32 %v4900_v30, %v1170_v59 }
 0x1ea   : > { %v1467_v39 = vadd.f32 %v4895_v20, %v1162_v28  ;;  %v5004_v18 = vadd.f32 %v3287_v22, %v4928_v29 }
 0x1ec   : > { %v3484_v48 = vpop.f32.mrb[76].mxu0  ;;  %v3288_v32 = vpop.f32.mrb[76].mxu1 }
 0x1ed   : > { %v1183_v8 = vadd.f32 %v3484_v48, %v4879_v63  ;;  %v1174_v53 = vpop.f32.mrb[77].mxu0  ;;  %v3289_v62 = vpop.f32.mrb[77].mxu1 }
 0x1ee   : > { %v1175_v12 = vadd.f32 %v4866_v2, %v1174_v53  ;;  %v3485_v26 = vpop.f32.mrb[78].mxu0  ;;  %v3290_v30 = vadd.f32 %v3289_v62, %v3288_v32  ;;  %v3291_v6 = vpop.f32.mrb[78].mxu1 }
 0x1ef   : > { %v5009_v1 = vadd.f32 %v4906_v60, %v1183_v8  ;;  %v1186_v31 = vadd.f32 %v3485_v26, %v4884_v5  ;;  %v1177_v20 = vpop.f32.mrb[79].mxu0  ;;  %v3292_v61 = vpop.f32.mrb[79].mxu1 }
 0x1f0   : > { %v1480_v29 = vadd.f32 %v4902_v47, %v1175_v12  ;;  %v1178_v7 = vadd.f32 %v4871_v43, %v1177_v20  ;;  %v5015_v63 = vadd.f32 %v3290_v30, %v4934_v44  ;;  %v3293_v19 = vadd.f32 %v3292_v61, %v3291_v6 }
 0x1f1   : > { %v5018_v2 = vadd.f32 %v4908_v3, %v1186_v31 }
 0x1f2   : > { %v1483_v60 = vadd.f32 %v4904_v34, %v1178_v7  ;;  %v5022_v42 = vadd.f32 %v3293_v19, %v4936_v4 }
 0x1f4   : > { %v3334_v5 = vpop.f32.mrb[80].mxu0 }
 0x1f5   : > { %v3335_v36 = vpop.f32.mrb[81].mxu0 }
 0x1f6   : > { %v3336_v54 = vadd.f32 %v3335_v36, %v3334_v5  ;;  %v3337_v33 = vpop.f32.mrb[82].mxu0 }
 0x1f7   : > { %v3338_v47 = vpop.f32.mrb[83].mxu0 }
 0x1f8   : > { %v3339_v51 = vadd.f32 %v3338_v47, %v3337_v33  ;;  %v5025_v43 = vadd.f32 %v3336_v54, %v4949_v25 }
 0x1fa   : > { %v5028_v44 = vadd.f32 %v3339_v51, %v4959_v9 }
 0x1fc   : > { %v3340_v3 = vpop.f32.mrb[84].mxu0 }
 0x1fd   : > { %v3341_v27 = vpop.f32.mrb[85].mxu0 }
 0x1fe   : > { %v3342_v24 = vadd.f32 %v3341_v27, %v3340_v3  ;;  %v3343_v59 = vpop.f32.mrb[86].mxu0 }
 0x1ff   : > { %v3344_v34 = vpop.f32.mrb[87].mxu0 }
 0x200   : > { %v3345_v45 = vadd.f32 %v3344_v34, %v3343_v59  ;;  %v3616_v4 = vadd.f32 %v3342_v24, %v4945_v0 }
 0x202   : > { %v3624_v13 = vadd.f32 %v3345_v45, %v4956_v56 }
 0x204   : > { %v3346_v28 = vpop.f32.mrb[88].mxu0 }
 0x205   : > { %v3347_v38 = vpop.f32.mrb[89].mxu0 }
 0x206   : > { %v3348_v22 = vadd.f32 %v3347_v38, %v3346_v28  ;;  %v3349_v48 = vpop.f32.mrb[90].mxu0 }
 0x207   : > { %v3350_v8 = vpop.f32.mrb[91].mxu0 }
 0x208   : > { %v3351_v25 = vadd.f32 %v3350_v8, %v3349_v48  ;;  %v5033_v32 = vadd.f32 %v3348_v22, %v4971_v40 }
 0x20a   : > { %v5036_v9 = vadd.f32 %v3351_v25, %v4981_v50 }
 0x20c   : > { %v3352_v53 = vpop.f32.mrb[92].mxu0 }
 0x20d   : > { %v3353_v12 = vpop.f32.mrb[93].mxu0 }
 0x20e   : > { %v3354_v62 = vadd.f32 %v3353_v12, %v3352_v53  ;;  %v3355_v26 = vpop.f32.mrb[94].mxu0 }
 0x20f   : > { %v3356_v30 = vpop.f32.mrb[95].mxu0 }
 0x210   : > { %v3357_v0 = vadd.f32 %v3356_v30, %v3355_v26  ;;  %v5039_v56 = vadd.f32 %v3354_v62, %v4967_v21 }
 0x212   : > { %v5042_v31 = vadd.f32 %v3357_v0, %v4978_v41 }
 0x214   : > { %v3358_v6 = vpop.f32.mrb[96].mxu0 }
 0x215   : > { %v3359_v20 = vpop.f32.mrb[97].mxu0 }
 0x216   : > { %v3360_v7 = vadd.f32 %v3359_v20, %v3358_v6  ;;  %v3361_v40 = vpop.f32.mrb[98].mxu0 }
 0x217   : > { %v3362_v61 = vpop.f32.mrb[99].mxu0 }
 0x218   : > { %v3363_v19 = vadd.f32 %v3362_v61, %v3361_v40  ;;  %v5045_v50 = vadd.f32 %v3360_v7, %v4993_v46 }
 0x21a   : > { %v5047_v5 = vadd.f32 %v3363_v19, %v1467_v39 }
 0x21c   : > { %v3364_v36 = vpop.f32.mrb[100].mxu0 }
 0x21d   : > { %v3365_v54 = vpop.f32.mrb[101].mxu0 }
 0x21e   : > { %v3366_v33 = vadd.f32 %v3365_v54, %v3364_v36  ;;  %v3367_v47 = vpop.f32.mrb[102].mxu0 }
 0x21f   : > { %v3368_v21 = vpop.f32.mrb[103].mxu0 }
 0x220   : > { %v3369_v51 = vadd.f32 %v3368_v21, %v3367_v47  ;;  %v5050_v41 = vadd.f32 %v3366_v33, %v4989_v23 }
 0x222   : > { %v5053_v3 = vadd.f32 %v3369_v51, %v5000_v52 }
 0x224   : > { %v3370_v27 = vpop.f32.mrb[104].mxu0 }
 0x225   : > { %v3371_v24 = vpop.f32.mrb[105].mxu0 }
 0x226   : > { %v3372_v59 = vadd.f32 %v3371_v24, %v3370_v27  ;;  %v3373_v34 = vpop.f32.mrb[106].mxu0 }
 0x227   : > { %v3374_v46 = vpop.f32.mrb[107].mxu0 }
 0x228   : > { %v3375_v45 = vadd.f32 %v3374_v46, %v3373_v34  ;;  %v5055_v39 = vadd.f32 %v3372_v59, %v1480_v29 }
 0x22a   : > { %v5057_v28 = vadd.f32 %v3375_v45, %v1483_v60 }
 0x22c   : > { %v3376_v38 = vpop.f32.mrb[108].mxu0 }
 0x22d   : > { %v3377_v22 = vpop.f32.mrb[109].mxu0 }
 0x22e   : > { %v3378_v48 = vadd.f32 %v3377_v22, %v3376_v38  ;;  %v3379_v8 = vpop.f32.mrb[110].mxu0 }
 0x22f   : > { %v3380_v23 = vpop.f32.mrb[111].mxu0 }
 0x230   : > { %v3381_v25 = vadd.f32 %v3380_v23, %v3379_v8  ;;  %v5060_v52 = vadd.f32 %v3378_v48, %v5009_v1 }
 0x232   : > { %v5063_v53 = vadd.f32 %v3381_v25, %v5018_v2 }
 0x234   : > { %v3382_v12 = vpop.f32.mrb[112].mxu0  ;;  %v3568_v62 = vpop.f32.mrb[80].mxu1 }
 0x235   : > { %v3383_v26 = vpop.f32.mrb[113].mxu0  ;;  %v3617_v29 = vadd.f32 %v3616_v4, %v3568_v62  ;;  %v2126_v60 = vpop.f32.mrb[81].mxu1 }
 0x236   : > { %v3384_v30 = vadd.f32 %v3383_v26, %v3382_v12  ;;  %v3385_v0 = vpop.f32.mrb[114].mxu0  ;;  %v3621_v6 = vadd.f32 %v5025_v43, %v2126_v60  ;;  %v3569_v20 = vpop.f32.mrb[82].mxu1 }
 0x237   : > { %v3386_v7 = vpop.f32.mrb[115].mxu0  ;;  %v3625_v40 = vadd.f32 %v3624_v13, %v3569_v20  ;;  %v2129_v19 = vpop.f32.mrb[83].mxu1 }
 0x238   : > { %v3387_v61 = vadd.f32 %v3386_v7, %v3385_v0  ;;  %v5068_v1 = vadd.f32 %v4914_v58, %v3384_v30  ;;  %v3629_v2 = vadd.f32 %v5028_v44, %v2129_v19 }
 0x239   : > { %v2286_v36 = vpack.c.bf16 %v3625_v40, %v3617_v29 }
 0x23a   : > { %v5072_v54 = vadd.f32 %v4916_v49, %v3387_v61  ;;  %v2285_v4 = vpack.c.bf16 %v3629_v2, %v3621_v6 }
 0x23b   : > { %3031 = vst [vmem:[%s5074_s25 + $0x8] sm:$0xff] %v2286_v36   ;;  %v2447_v33 = vunpack.c.l.bf16 %v2286_v36  ;;  %v2448_v51 = vunpack.c.h.bf16 %v2286_v36 }
 0x23c   : > { %v3388_v43 = vpop.f32.mrb[116].mxu0  ;;  %2955 = vst [vmem:[%s5074_s25] sm:$0xff] %v2285_v4   ;;  %v2445_v13 = vunpack.c.l.bf16 %v2285_v4  ;;  %v2446_v47 = vunpack.c.h.bf16 %v2285_v4  ;;  %v3572_v21 = vpop.f32.mrb[84].mxu1 }
 0x23d   : > { %v3389_v58 = vpop.f32.mrb[117].mxu0  ;;  %v3633_v44 = vadd.f32 %v5039_v56, %v3572_v21  ;;  %v2142_v24 = vpop.f32.mrb[85].mxu1  ;;  %v2520_v56 = vmul.f32 %v2447_v33, %v2447_v33 }
 0x23e   : > { %v3390_v27 = vadd.f32 %v3389_v58, %v3388_v43  ;;  %v3391_v49 = vpop.f32.mrb[118].mxu0  ;;  %v2478_v59 = vadd.f32 %v2446_v47, %v2445_v13  ;;  %v2518_v34 = vmul.f32 %v2445_v13, %v2445_v13  ;;  %v2519_v46 = vmul.f32 %v2446_v47, %v2446_v47  ;;  %v3573_v38 = vpop.f32.mrb[86].mxu1 }
 0x23f   : > { %v3637_v45 = vadd.f32 %v5033_v32, %v2142_v24  ;;  %v3392_v22 = vpop.f32.mrb[119].mxu0  ;;  %v3641_v48 = vadd.f32 %v5042_v31, %v3573_v38  ;;  %v2145_v23 = vpop.f32.mrb[87].mxu1  ;;  %v2521_v32 = vmul.f32 %v2448_v51, %v2448_v51 }
 0x240   : > { %v3393_v8 = vadd.f32 %v3392_v22, %v3391_v49  ;;  %v5082_v25 = vadd.f32 %v4922_v14, %v3390_v27  ;;  %v2479_v12 = vadd.f32 %v2478_v59, %v2447_v33  ;;  %v2550_v62 = vadd.f32 %v2519_v46, %v2518_v34  ;;  %v5297_v46 = vld [vmem:[#allocation15_spill] sm:$0xff] }
 0x241   : > { %v3645_v26 = vadd.f32 %v5036_v9, %v2145_v23  ;;  %v2288_v29 = vpack.c.bf16 %v3641_v48, %v3633_v44 }
 0x242   : > { %v5086_v30 = vadd.f32 %v4924_v15, %v3393_v8  ;;  %v2551_v60 = vadd.f32 %v2550_v62, %v2520_v56  ;;  %v2480_v6 = vadd.f32 %v2479_v12, %v2448_v51 }
 0x243   : > { %v2287_v0 = vpack.c.bf16 %v3645_v26, %v3637_v45  ;;  %3033 = vst [vmem:[%s5074_s25 + $0x18] sm:$0xff] %v2288_v29   ;;  %v2451_v4 = vunpack.c.l.bf16 %v2288_v29  ;;  %v2452_v21 = vunpack.c.h.bf16 %v2288_v29 }
 0x244   : > { %v3394_v31 = vpop.f32.mrb[120].mxu0  ;;  %v2552_v14 = vadd.f32 %v2551_v60, %v2521_v32  ;;  %v3576_v40 = vpop.f32.mrb[88].mxu1 }
 0x245   : > { %3032 = vst [vmem:[%s5074_s25 + $0x10] sm:$0xff] %v2287_v0   ;;  %v2449_v20 = vunpack.c.l.bf16 %v2287_v0  ;;  %v2450_v7 = vunpack.c.h.bf16 %v2287_v0  ;;  %v3395_v61 = vpop.f32.mrb[121].mxu0  ;;  %v3649_v19 = vadd.f32 %v5050_v41, %v3576_v40  ;;  %v2158_v9 = vpop.f32.mrb[89].mxu1  ;;  %v2524_v45 = vmul.f32 %v2451_v4, %v2451_v4 }
 0x246   : > { %v3396_v2 = vadd.f32 %v3395_v61, %v3394_v31  ;;  %v3397_v36 = vpop.f32.mrb[122].mxu0  ;;  %v3653_v33 = vadd.f32 %v5045_v50, %v2158_v9  ;;  %v3577_v13 = vpop.f32.mrb[90].mxu1 }
 0x247   : > { %v2481_v15 = vadd.f32 %v2480_v6, %v2449_v20  ;;  %v2522_v43 = vmul.f32 %v2449_v20, %v2449_v20  ;;  %v3398_v47 = vpop.f32.mrb[123].mxu0  ;;  %v3657_v58 = vadd.f32 %v5053_v3, %v3577_v13  ;;  %v2161_v44 = vpop.f32.mrb[91].mxu1  ;;  %v2523_v24 = vmul.f32 %v2450_v7, %v2450_v7 }
 0x248   : > { %v3399_v51 = vadd.f32 %v3398_v47, %v3397_v36  ;;  %v5094_v27 = vadd.f32 %v4930_v55, %v3396_v2  ;;  %v3661_v59 = vadd.f32 %v5047_v5, %v2161_v44  ;;  %v2525_v3 = vmul.f32 %v2452_v21, %v2452_v21 }
 0x249   : > { %v2482_v41 = vadd.f32 %v2481_v15, %v2450_v7  ;;  %v2553_v49 = vadd.f32 %v2552_v14, %v2522_v43  ;;  %v2290_v34 = vpack.c.bf16 %v3657_v58, %v3649_v19 }
 0x24a   : > { %v5098_v50 = vadd.f32 %v5297_v46, %v3399_v51  ;;  %v2289_v48 = vpack.c.bf16 %v3661_v59, %v3653_v33 }
 0x24b   : > { %v2483_v38 = vadd.f32 %v2482_v41, %v2451_v4  ;;  %v2554_v22 = vadd.f32 %v2553_v49, %v2523_v24  ;;  %3035 = vst [vmem:[%s5074_s25 + $0x28] sm:$0xff] %v2290_v34   ;;  %v2455_v29 = vunpack.c.l.bf16 %v2290_v34  ;;  %v2456_v6 = vunpack.c.h.bf16 %v2290_v34 }
 0x24c   : > { %v3400_v8 = vpop.f32.mrb[124].mxu0  ;;  %3034 = vst [vmem:[%s5074_s25 + $0x20] sm:$0xff] %v2289_v48   ;;  %v2453_v55 = vunpack.c.l.bf16 %v2289_v48  ;;  %v2454_v56 = vunpack.c.h.bf16 %v2289_v48  ;;  %v3580_v62 = vpop.f32.mrb[92].mxu1 }
 0x24d   : > { %v2555_v23 = vadd.f32 %v2554_v22, %v2524_v45  ;;  %v2484_v12 = vadd.f32 %v2483_v38, %v2452_v21  ;;  %v3401_v26 = vpop.f32.mrb[125].mxu0  ;;  %v3665_v5 = vadd.f32 %v5060_v52, %v3580_v62  ;;  %v2174_v60 = vpop.f32.mrb[93].mxu1  ;;  %v2528_v47 = vmul.f32 %v2455_v29, %v2455_v29 }
 0x24e   : > { %v3402_v32 = vadd.f32 %v3401_v26, %v3400_v8  ;;  %v3403_v0 = vpop.f32.mrb[126].mxu0  ;;  %v2526_v20 = vmul.f32 %v2453_v55, %v2453_v55  ;;  %v3581_v14 = vpop.f32.mrb[94].mxu1  ;;  %v3669_v61 = vadd.f32 %v5055_v39, %v2174_v60  ;;  %v2527_v4 = vmul.f32 %v2454_v56, %v2454_v56 }
 0x24f   : > { %v2485_v31 = vadd.f32 %v2484_v12, %v2453_v55  ;;  %v2556_v7 = vadd.f32 %v2555_v23, %v2525_v3  ;;  %v3404_v40 = vpop.f32.mrb[127].mxu0  ;;  %v3673_v19 = vadd.f32 %v5063_v53, %v3581_v14  ;;  %v2177_v9 = vpop.f32.mrb[95].mxu1  ;;  %v2529_v51 = vmul.f32 %v2456_v6, %v2456_v6 }
 0x250   : > { %v3405_v2 = vadd.f32 %v3404_v40, %v3403_v0  ;;  %v3691_v36 = vadd.f32 %v4938_v16, %v3402_v32  ;;  %v3677_v43 = vadd.f32 %v5057_v28, %v2177_v9 }
 0x251   : > { %v2486_v52 = vadd.f32 %v2485_v31, %v2454_v56  ;;  %v2557_v15 = vadd.f32 %v2556_v7, %v2526_v20  ;;  %v2292_v33 = vpack.c.bf16 %v3673_v19, %v3665_v5 }
 0x252   : > { %v5108_v13 = vadd.f32 %v4940_v11, %v3405_v2  ;;  %v2291_v58 = vpack.c.bf16 %v3677_v43, %v3669_v61 }
 0x253   : > { %v2487_v21 = vadd.f32 %v2486_v52, %v2455_v29  ;;  %v2558_v39 = vadd.f32 %v2557_v15, %v2527_v4  ;;  %3037 = vst [vmem:[%s5074_s25 + $0x38] sm:$0xff] %v2292_v33   ;;  %v2459_v34 = vunpack.c.l.bf16 %v2292_v33  ;;  %v2460_v38 = vunpack.c.h.bf16 %v2292_v33 }
 0x254   : > { %v3406_v53 = vpop.f32.mrb[128].mxu0  ;;  %3036 = vst [vmem:[%s5074_s25 + $0x30] sm:$0xff] %v2291_v58   ;;  %v2457_v41 = vunpack.c.l.bf16 %v2291_v58  ;;  %v2458_v16 = vunpack.c.h.bf16 %v2291_v58  ;;  %v3584_v49 = vpop.f32.mrb[0].mxu1 }
 0x255   : > { %v2559_v44 = vadd.f32 %v2558_v39, %v2528_v47  ;;  %v2488_v24 = vadd.f32 %v2487_v21, %v2456_v6  ;;  %v3407_v59 = vpop.f32.mrb[129].mxu0  ;;  %v3680_v28 = vadd.f32 %v5082_v25, %v3584_v49  ;;  %v2190_v11 = vpop.f32.mrb[1].mxu1  ;;  %v2532_v6 = vmul.f32 %v2459_v34, %v2459_v34 }
 0x256   : > { %v3408_v46 = vadd.f32 %v3407_v59, %v3406_v53  ;;  %v3409_v45 = vpop.f32.mrb[130].mxu0  ;;  %v2530_v48 = vmul.f32 %v2457_v41, %v2457_v41  ;;  %v3585_v8 = vpop.f32.mrb[2].mxu1  ;;  %v3683_v55 = vadd.f32 %v5068_v1, %v2190_v11  ;;  %v2531_v29 = vmul.f32 %v2458_v16, %v2458_v16 }
 0x257   : > { %v2489_v22 = vadd.f32 %v2488_v24, %v2457_v41  ;;  %v2560_v3 = vadd.f32 %v2559_v44, %v2529_v51  ;;  %v3410_v23 = vpop.f32.mrb[131].mxu0  ;;  %v3686_v56 = vadd.f32 %v5086_v30, %v3585_v8  ;;  %v2193_v62 = vpop.f32.mrb[3].mxu1  ;;  %v2533_v30 = vmul.f32 %v2460_v38, %v2460_v38 }
 0x258   : > { %v3411_v12 = vadd.f32 %v3410_v23, %v3409_v45  ;;  %v5116_v26 = vadd.f32 %v4953_v57, %v3408_v46  ;;  %v3689_v32 = vadd.f32 %v5072_v54, %v2193_v62 }
 0x259   : > { %v2490_v25 = vadd.f32 %v2489_v22, %v2458_v16  ;;  %v2561_v5 = vadd.f32 %v2560_v3, %v2530_v48  ;;  %v2294_v60 = vpack.c.bf16 %v3686_v56, %v3680_v28 }
 0x25a   : > { %v5120_v0 = vadd.f32 %v4962_v35, %v3411_v12  ;;  %v2293_v20 = vpack.c.bf16 %v3689_v32, %v3683_v55 }
 0x25b   : > { %v2491_v1 = vadd.f32 %v2490_v25, %v2459_v34  ;;  %v2562_v31 = vadd.f32 %v2561_v5, %v2531_v29  ;;  %3039 = vst [vmem:[%s5074_s25 + $0x48] sm:$0xff] %v2294_v60   ;;  %v2463_v9 = vunpack.c.l.bf16 %v2294_v60  ;;  %v2464_v15 = vunpack.c.h.bf16 %v2294_v60 }
 0x25c   : > { %v3412_v7 = vpop.f32.mrb[132].mxu0  ;;  %3038 = vst [vmem:[%s5074_s25 + $0x40] sm:$0xff] %v2293_v20   ;;  %v2461_v57 = vunpack.c.l.bf16 %v2293_v20  ;;  %v2462_v40 = vunpack.c.h.bf16 %v2293_v20  ;;  %v3588_v19 = vpop.f32.mrb[4].mxu1 }
 0x25d   : > { %v2563_v14 = vadd.f32 %v2562_v31, %v2532_v6  ;;  %v2492_v61 = vadd.f32 %v2491_v1, %v2460_v38  ;;  %v3413_v2 = vpop.f32.mrb[133].mxu0  ;;  %v3692_v54 = vadd.f32 %v3691_v36, %v3588_v19  ;;  %v2206_v4 = vpop.f32.mrb[5].mxu1  ;;  %v2536_v28 = vmul.f32 %v2463_v9, %v2463_v9 }
 0x25e   : > { %v3414_v52 = vadd.f32 %v3413_v2, %v3412_v7  ;;  %v3415_v35 = vpop.f32.mrb[134].mxu0  ;;  %v2534_v33 = vmul.f32 %v2461_v57, %v2461_v57  ;;  %v3589_v21 = vpop.f32.mrb[6].mxu1  ;;  %v3695_v58 = vadd.f32 %v5094_v27, %v2206_v4  ;;  %v2535_v16 = vmul.f32 %v2462_v40, %v2462_v40 }
 0x25f   : > { %v2493_v43 = vadd.f32 %v2492_v61, %v2461_v57  ;;  %v2564_v47 = vadd.f32 %v2563_v14, %v2533_v30  ;;  %v3416_v39 = vpop.f32.mrb[135].mxu0  ;;  %v3698_v51 = vadd.f32 %v5108_v13, %v3589_v21  ;;  %v2209_v44 = vpop.f32.mrb[7].mxu1  ;;  %v2537_v45 = vmul.f32 %v2464_v15, %v2464_v15 }
 0x260   : > { %v3417_v53 = vadd.f32 %v3416_v39, %v3415_v35  ;;  %v3703_v41 = vadd.f32 %v4975_v37, %v3414_v52  ;;  %v3701_v49 = vadd.f32 %v5098_v50, %v2209_v44 }
 0x261   : > { %v2494_v36 = vadd.f32 %v2493_v43, %v2462_v40  ;;  %v2565_v24 = vadd.f32 %v2564_v47, %v2534_v33  ;;  %v2296_v59 = vpack.c.bf16 %v3698_v51, %v3692_v54 }
 0x262   : > { %v3709_v34 = vadd.f32 %v4984_v17, %v3417_v53  ;;  %v2295_v27 = vpack.c.bf16 %v3701_v49, %v3695_v58 }
 0x263   : > { %v2495_v46 = vadd.f32 %v2494_v36, %v2463_v9  ;;  %v2566_v11 = vadd.f32 %v2565_v24, %v2535_v16  ;;  %3041 = vst [vmem:[%s5074_s25 + $0x58] sm:$0xff] %v2296_v59   ;;  %v2467_v23 = vunpack.c.l.bf16 %v2296_v59  ;;  %v2468_v17 = vunpack.c.h.bf16 %v2296_v59 }
 0x264   : > { %v3418_v13 = vpop.f32.mrb[136].mxu0  ;;  %3040 = vst [vmem:[%s5074_s25 + $0x50] sm:$0xff] %v2295_v27   ;;  %v2465_v22 = vunpack.c.l.bf16 %v2295_v27  ;;  %v2466_v48 = vunpack.c.h.bf16 %v2295_v27  ;;  %v3592_v3 = vpop.f32.mrb[8].mxu1 }
 0x265   : > { %v2567_v38 = vadd.f32 %v2566_v11, %v2536_v28  ;;  %v2496_v37 = vadd.f32 %v2495_v46, %v2464_v15  ;;  %v3419_v8 = vpop.f32.mrb[137].mxu0  ;;  %v3704_v55 = vadd.f32 %v3703_v41, %v3592_v3  ;;  %v2222_v56 = vpop.f32.mrb[9].mxu1  ;;  %v2540_v19 = vmul.f32 %v2467_v23, %v2467_v23 }
 0x266   : > { %v3420_v50 = vadd.f32 %v3419_v8, %v3418_v13  ;;  %v3421_v12 = vpop.f32.mrb[138].mxu0  ;;  %v2538_v25 = vmul.f32 %v2465_v22, %v2465_v22  ;;  %v3593_v5 = vpop.f32.mrb[10].mxu1  ;;  %v3707_v60 = vadd.f32 %v5116_v26, %v2222_v56  ;;  %v2539_v7 = vmul.f32 %v2466_v48, %v2466_v48 }
 0x267   : > { %v2497_v62 = vadd.f32 %v2496_v37, %v2465_v22  ;;  %v2568_v29 = vadd.f32 %v2567_v38, %v2537_v45  ;;  %v3422_v32 = vpop.f32.mrb[139].mxu0  ;;  %v3710_v6 = vadd.f32 %v3709_v34, %v3593_v5  ;;  %v2225_v31 = vpop.f32.mrb[11].mxu1  ;;  %v2541_v26 = vmul.f32 %v2468_v17, %v2468_v17 }
 0x268   : > { %v3423_v1 = vadd.f32 %v3422_v32, %v3421_v12  ;;  %v3718_v20 = vadd.f32 %v4997_v10, %v3420_v50  ;;  %v3713_v57 = vadd.f32 %v5120_v0, %v2225_v31 }
 0x269   : > { %v2498_v30 = vadd.f32 %v2497_v62, %v2466_v48  ;;  %v2569_v14 = vadd.f32 %v2568_v29, %v2538_v25  ;;  %v2298_v40 = vpack.c.bf16 %v3710_v6, %v3704_v55 }
 0x26a   : > { %v3724_v61 = vadd.f32 %v5004_v18, %v3423_v1  ;;  %v2297_v54 = vpack.c.bf16 %v3713_v57, %v3707_v60 }
 0x26b   : > { %v2499_v2 = vadd.f32 %v2498_v30, %v2467_v23  ;;  %v2570_v9 = vadd.f32 %v2569_v14, %v2539_v7  ;;  %3043 = vst [vmem:[%s5074_s25 + $0x68] sm:$0xff] %v2298_v40   ;;  %v2471_v39 = vunpack.c.l.bf16 %v2298_v40  ;;  %v2472_v41 = vunpack.c.h.bf16 %v2298_v40 }
 0x26c   : > { %v3424_v52 = vpop.f32.mrb[140].mxu0  ;;  %3042 = vst [vmem:[%s5074_s25 + $0x60] sm:$0xff] %v2297_v54   ;;  %v2469_v35 = vunpack.c.l.bf16 %v2297_v54  ;;  %v2470_v15 = vunpack.c.h.bf16 %v2297_v54  ;;  %v3596_v43 = vpop.f32.mrb[12].mxu1 }
 0x26d   : > { %v2571_v4 = vadd.f32 %v2570_v9, %v2540_v19  ;;  %v2500_v10 = vadd.f32 %v2499_v2, %v2468_v17  ;;  %v3425_v33 = vpop.f32.mrb[141].mxu0  ;;  %v2238_v21 = vpop.f32.mrb[13].mxu1  ;;  %v2544_v45 = vmul.f32 %v2471_v39, %v2471_v39  ;;  %v2545_v48 = vmul.f32 %v2472_v41, %v2472_v41 }
 0x26e   : > { %v3426_v47 = vadd.f32 %v3425_v33, %v3424_v52  ;;  %v3427_v0 = vpop.f32.mrb[142].mxu0  ;;  %v2542_v18 = vmul.f32 %v2469_v35, %v2469_v35  ;;  %v3597_v53 = vpop.f32.mrb[14].mxu1  ;;  %v3719_v16 = vadd.f32 %v3718_v20, %v2238_v21  ;;  %v2543_v34 = vmul.f32 %v2470_v15, %v2470_v15 }
 0x26f   : > { %v2501_v58 = vadd.f32 %v2500_v10, %v2469_v35  ;;  %v2572_v51 = vadd.f32 %v2571_v4, %v2541_v26  ;;  %v3428_v44 = vpop.f32.mrb[143].mxu0  ;;  %v2241_v49 = vpop.f32.mrb[15].mxu1 }
 0x270   : > { %v3715_v36 = vadd.f32 %v5015_v63, %v3426_v47  ;;  %v3429_v24 = vadd.f32 %v3428_v44, %v3427_v0  ;;  %v3725_v46 = vadd.f32 %v3724_v61, %v2241_v49 }
 0x271   : > { %v2502_v59 = vadd.f32 %v2501_v58, %v2470_v15  ;;  %v2573_v28 = vadd.f32 %v2572_v51, %v2542_v18 }
 0x272   : > { %v3716_v11 = vadd.f32 %v3715_v36, %v3596_v43  ;;  %v3721_v27 = vadd.f32 %v5022_v42, %v3429_v24  ;;  %v2299_v22 = vpack.c.bf16 %v3725_v46, %v3719_v16 }
 0x273   : > { %v2503_v13 = vadd.f32 %v2502_v59, %v2471_v39  ;;  %v2574_v38 = vadd.f32 %v2573_v28, %v2543_v34 }
 0x274   : > { %v3722_v63 = vadd.f32 %v3721_v27, %v3597_v53  ;;  %3044 = vst [vmem:[%s5074_s25 + $0x70] sm:$0xff] %v2299_v22   ;;  %v2473_v3 = vunpack.c.l.bf16 %v2299_v22  ;;  %v2474_v8 = vunpack.c.h.bf16 %v2299_v22 }
 0x275   : > { %v2575_v37 = vadd.f32 %v2574_v38, %v2544_v45  ;;  %v2504_v23 = vadd.f32 %v2503_v13, %v2472_v41 }
 0x276   : > { %v2300_v42 = vpack.c.bf16 %v3722_v63, %v3716_v11  ;;  %v2546_v50 = vmul.f32 %v2473_v3, %v2473_v3  ;;  %v2547_v25 = vmul.f32 %v2474_v8, %v2474_v8 }
 0x277   : > { %v2505_v55 = vadd.f32 %v2504_v23, %v2473_v3  ;;  %v2576_v56 = vadd.f32 %v2575_v37, %v2545_v48 }
 0x278   : > { %3045 = vst [vmem:[%s5074_s25 + $0x78] sm:$0xff] %v2300_v42   ;;  %v2475_v12 = vunpack.c.l.bf16 %v2300_v42  ;;  %v2476_v17 = vunpack.c.h.bf16 %v2300_v42 }
 0x279   : > { %v2506_v62 = vadd.f32 %v2505_v55, %v2474_v8  ;;  %v2577_v29 = vadd.f32 %v2576_v56, %v2546_v50 }
 0x27a   : > { %4010 = shalt.err (!%p4007_p9)
}
 0x27b   : > { %s4011_s13 = scalar_lea.hbm %s5145_s6, 2048  ;;  %s4015_s10 = scalar_lea.hbm %s5268_s2, 4096 }
 0x27c   : > { %p4012_p1 = scmp.ne.s32.totalorder %s5145_s6, %s4011_s13  ;;  %p4016_p7 = scmp.lt.u32.totalorder %s5145_s6, %s5268_s2 }
 0x27d   : > { %p4017_p11 = scmp.lt.u32.totalorder %s4015_s10, %s4011_s13  ;;  %p4019_p6 = scmp.lt.u32.totalorder %s4011_s13, %s5145_s6 }
 0x27e   : > { %p4013_p2 = pnand %p4012_p1, %p4271_p10 }
 0x27f   : > { %p4018_p4 = por %p4017_p11, %p4016_p7 }
 0x280   : > { %p4014_p3 = pneg %p4013_p2 }
 0x281   : > { %p4020_p8 = por %p4019_p6, %p4018_p4 }
 0x283   : > { %p4021_p12 = pnand %p4020_p8, %p4014_p3 }
 0x285   : > { %4024 = shalt.err (!%p4021_p12)
}
 0x286   : > { %s4152_s30 = smov 64   ;;  %s4153_s27 = smov 4   ;;  %v2548_v5 = vmul.f32 %v2475_v12, %v2475_v12  ;;  %v2507_v32 = vadd.f32 %v2506_v62, %v2475_v12  ;;  %v2578_v60 = vadd.f32 %v2577_v29, %v2547_v25  ;;  %v2549_v6 = vmul.f32 %v2476_v17, %v2476_v17 }
 0x287   : > { %3783 = dma.vmem_to_hbm [thread:$0]  (%p4271_p10), %s5147_s11, 2048, %s5145_s6, %s2590_s7, %s4152_s30, %s4152_s30, %s4153_s27  }
 0x288   : > { %v2508_v1 = vadd.f32 %v2507_v32, %v2476_v17  ;;  %v2579_v31 = vadd.f32 %v2578_v60, %v2548_v5  ;;  %s2803_s12 = sshll.u32 %s4325_s9, 3  ;;  %s2594_s11 = sand.u32 1, %s4212_s21  }
 0x289   : > { %s2914_s6 = sshll.u32 %s4135_s18, 7  ;;  %s258_s7 = scalar_lea.vmem [#allocation8], %s2803_s12 }
 0x28a   : > { %v2509_v20 = vrot.slane %v2508_v1, 4  ;;  %v2580_v30 = vadd.f32 %v2579_v31, %v2549_v6  ;;  %s2630_s28 = sshll.u32 %s258_s7, 4  ;;  %s5177_s13 = scalar_lea.vmem [#allocation10], %s2803_s12  ;;  %s5185_s28 = int_to_ptr.vmem [resolvable:$true] %s2630_s28 }
 0x28b   : > { %s2643_s23 = sshll.u32 %s5177_s13, 4  ;;  %s5183_s9 = scalar_lea.hbm %s5269_s3, %s2914_s6  ;;  %s5192_s23 = int_to_ptr.vmem [resolvable:$true] %s2643_s23 }
 0x28c   : > { %v2510_v7 = vadd.f32 %v2509_v20, %v2508_v1  ;;  %v2581_v14 = vrot.slane %v2580_v30, 4  ;;  %s5190_s14 = scalar_lea.hbm %s5270_s4, %s2914_s6  ;;  %s5194_s26 = scalar_lea.sflag [#allocation9], %s2594_s11 }
 0x28d   : > { %s4025_s30 = scalar_lea.vmem %s5185_s28, 128  ;;  %s4154_s27 = smov [#allocation8]  }
 0x28e   : > { %v2511_v57 = vrot.slane %v2510_v7, 2  ;;  %v2582_v40 = vadd.f32 %v2581_v14, %v2580_v30  ;;  %p4026_p13 = scmp.ne.s32.totalorder %s5185_s28, %s4025_s30  ;;  %s4029_s12 = sshll.u32 %s4154_s27, 4  ;;  %s4030_s12 = int_to_ptr.vmem [resolvable:$false] %s4029_s12 }
 0x28f   : > { %s4031_s25 = scalar_lea.vmem %s4030_s12, 256  ;;  %p4032_p9 = scmp.lt.s32.totalorder %s5185_s28, %s4030_s12 }
 0x290   : > { %v2583_v61 = vrot.slane %v2582_v40, 2  ;;  %v2512_v19 = vadd.f32 %v2511_v57, %v2510_v7  ;;  %p4027_p0 = pnand %p4026_p13, %p4271_p10  ;;  %p4033_p1 = scmp.lt.s32.totalorder %s4031_s25, %s4025_s30 }
 0x292   : > { %v2584_v2 = vadd.f32 %v2583_v61, %v2582_v40  ;;  %v2513_v9 = vrot.slane %v2512_v19, 1  ;;  %p4028_p5 = pneg %p4027_p0  ;;  %p4034_p2 = por %p4033_p1, %p4032_p9 }
 0x294   : > { %v2514_v54 = vadd.f32 %v2513_v9, %v2512_v19  ;;  %v2585_v26 = vrot.slane %v2584_v2, 1  ;;  %p4035_p3 = pnand %p4034_p2, %p4028_p5 }
 0x296   : > { %v2586_v52 = vadd.f32 %v2585_v26, %v2584_v2  ;;  %2516 = vst [vmem:[%s258_s7] sm:$0xff] %v2514_v54 }
 0x297   : > { %4038 = shalt.err (!%p4035_p3)
}
 0x298   : > { %s4039_s11 = scalar_lea.hbm %s5183_s9, 128  ;;  %s4043_s10 = scalar_lea.hbm %s5269_s3, 256 }
 0x299   : > { %p4040_p7 = scmp.ne.s32.totalorder %s5183_s9, %s4039_s11  ;;  %p4044_p6 = scmp.lt.u32.totalorder %s5183_s9, %s5269_s3 }
 0x29a   : > { %p4045_p8 = scmp.lt.u32.totalorder %s4043_s10, %s4039_s11  ;;  %p4047_p13 = scmp.lt.u32.totalorder %s4039_s11, %s5183_s9 }
 0x29b   : > { %p4041_p11 = pnand %p4040_p7, %p4271_p10 }
 0x29c   : > { %p4046_p12 = por %p4045_p8, %p4044_p6 }
 0x29d   : > { %p4042_p4 = pneg %p4041_p11 }
 0x29e   : > { %p4048_p0 = por %p4047_p13, %p4046_p12 }
 0x2a0   : > { %p4049_p5 = pnand %p4048_p0, %p4042_p4 }
 0x2a2   : > { %4052 = shalt.err (!%p4049_p5)
}
 0x2a3   : > { %3784 = dma.vmem_to_hbm [thread:$0]  (%p4271_p10), %s5185_s28, 128, %s5183_s9, %s5194_s26   ;;  %2588 = vst [vmem:[%s5177_s13] sm:$0xff] %v2586_v52 }
 0x2a4   : > { %s4053_s30 = scalar_lea.vmem %s5192_s23, 128  ;;  %s4155_s27 = smov [#allocation10]  }
 0x2a5   : > { %p4054_p9 = scmp.ne.s32.totalorder %s5192_s23, %s4053_s30  ;;  %s4057_s12 = sshll.u32 %s4155_s27, 4  ;;  %s4058_s12 = int_to_ptr.vmem [resolvable:$false] %s4057_s12 }
 0x2a6   : > { %s4059_s25 = scalar_lea.vmem %s4058_s12, 256  ;;  %p4060_p3 = scmp.lt.s32.totalorder %s5192_s23, %s4058_s12 }
 0x2a7   : > { %p4055_p1 = pnand %p4054_p9, %p4271_p10  ;;  %p4061_p7 = scmp.lt.s32.totalorder %s4059_s25, %s4053_s30 }
 0x2a9   : > { %p4056_p2 = pneg %p4055_p1  ;;  %p4062_p11 = por %p4061_p7, %p4060_p3 }
 0x2ab   : > { %p4063_p4 = pnand %p4062_p11, %p4056_p2 }
 0x2ad   : > { %4066 = shalt.err (!%p4063_p4)
}
 0x2ae   : > { %s4067_s28 = scalar_lea.hbm %s5190_s14, 128  ;;  %s4071_s11 = scalar_lea.hbm %s5270_s4, 256 }
 0x2af   : > { %p4068_p6 = scmp.ne.s32.totalorder %s5190_s14, %s4067_s28  ;;  %p4072_p13 = scmp.lt.u32.totalorder %s5190_s14, %s5270_s4 }
 0x2b0   : > { %p4073_p0 = scmp.lt.u32.totalorder %s4071_s11, %s4067_s28  ;;  %p4075_p9 = scmp.lt.u32.totalorder %s4067_s28, %s5190_s14 }
 0x2b1   : > { %p4069_p8 = pnand %p4068_p6, %p4271_p10 }
 0x2b2   : > { %p4074_p5 = por %p4073_p0, %p4072_p13 }
 0x2b3   : > { %p4070_p12 = pneg %p4069_p8 }
 0x2b4   : > { %p4076_p1 = por %p4075_p9, %p4074_p5 }
 0x2b6   : > { %p4077_p2 = pnand %p4076_p1, %p4070_p12 }
 0x2b8   : > { %4080 = shalt.err (!%p4077_p2)
}
 0x2b9   : > { %3785 = dma.vmem_to_hbm [thread:$0]  (%p4271_p10), %s5192_s23, 128, %s5190_s14, %s5194_s26  }
 0x2ba PF: > { %s2655_s10 = sand.u32 1, %s4123_s15   ;;  %p5298_p3 = scmp.ne.s32.totalorder %s5280_s24, 0 }
 0x2bb   : > { %p5299_p7 = scmp.ge.s32.totalorder %s4143_s20, 2  ;;  %s2656_s18 = scalar_lea.sflag [#allocation4], %s2655_s10 }
 0x2bd   : > { %p3798_p11 = pnand %p5299_p7, %p5298_p3 }
 0x2bf   : > { %4114 = dma.done.wait (!%p3798_p11), %s2656_s18, 2048  }
 0x2c0   : > { %4116 = vsyncadd (!%p3798_p11), %s2656_s18, 4294965248  ;;  %s2664_s21 = sand.u32 1, %s2795_s22  }
 0x2c1   : > { %s2665_s30 = scalar_lea.sflag [#allocation9], %s2664_s21 }
 0x2c2   : > { %4118 = dma.done.wait (!%p3798_p11), %s2665_s30, 256  }
 0x2c3   : > { %4120 = vsyncadd (!%p3798_p11), %s2665_s30, 4294967040  ;;  %s25_s20 = sadd.s32 1, %s4143_s20   ;;  %s5300_s15 = smov %s4127_s16 }
 0x2c4   : > { %p22_p10 = scmp.ge.s32.totalorder %s25_s20, 4   ;;  %s5301_s16 = smov %s4131_s17 }
 0x2c5   : > { %s5302_s17 = smov %s4280_s8  ;;  %s5303_s18 = smov %s4139_s19 }
 0x2c6   : > { %s5304_s19 = smov %s5306_s29  ;;  %24 = sbr.rel (!%p22_p10) target bundleno = 9 (0x9), region = 115 }
 0x2cd   :  { %2679 = vsyncpa [#allocation3], 1 }
 0x2ce   :  { %2681 = vsyncpa [#allocation3 + $0x1], 1 }
 0x2cf   :  { %2682 = vsyncpa [#allocation6], 1 }
 0x2d0   :  { %2683 = vsyncpa [#allocation4], 1 }
 0x2d1   :  { %2685 = vsyncpa [#allocation4 + $0x1], 1 }
 0x2d2   :  { %2686 = vsyncpa [#allocation9], 1 }
 0x2d3   :  { %2688 = vsyncpa [#allocation9 + $0x1], 1 }

</bundles_post_ra>
